<compile_context>
chip_gen: v5e
topology: v5e:2x2
jax: 0.10.0
libtpu: 0.0.40
codegen_flags: <defaults>
</compile_context>

<pallas_src>
import math

import jax
import jax.numpy as jnp
from jax.experimental import pallas as pl
from jax.experimental.pallas import tpu as pltpu


def _make_dwsep_kernel(H, W, C1, C2, K, S, P):
    Hc = H + 2 * P - K + 1          # stride-1 depthwise conv output height
    Wc = W + 2 * P - K + 1
    H2 = (Hc - 1) // S + 1          # after stride subsampling
    W2 = (Wc - 1) // S + 1

    def kernel(x_ref, wdw_ref, bdw_ref, wpw_ref, bpw_ref, o_ref, xpad_ref):
        # Zero-pad the image into VMEM scratch (no extra HBM round trip).
        xpad_ref[...] = jnp.zeros_like(xpad_ref)
        xpad_ref[P:P + H, P:P + W, :] = x_ref[0].astype(jnp.float32)

        # Depthwise KxK conv (BN1 scale already folded into wdw), unrolled taps (VPU).
        wdw = wdw_ref[...].astype(jnp.float32)               # (K, K, C1)
        acc = jnp.zeros((Hc, Wc, C1), jnp.float32)
        for dy in range(K):
            for dx in range(K):
                acc = acc + xpad_ref[dy:dy + Hc, dx:dx + Wc, :] * wdw[dy, dx, :]
        if S > 1:
            acc = acc[::S, ::S, :]
        h = jnp.maximum(acc + bdw_ref[...], 0.0)             # folded bias + ReLU

        # Pointwise 1x1 conv (BN2 folded), 'noop' activation.
        if C1 <= 16:
            # Tiny C: C1*C2 broadcast MACs on the VPU (MXU would waste most lanes).
            wpw = wpw_ref[...].astype(jnp.float32)           # (C1, C2)
            r = jnp.zeros((H2, W2, C2), jnp.float32) + bpw_ref[...]
            for c in range(C1):
                r = r + h[:, :, c:c + 1] * wpw[c, :]
        else:
            r = jnp.dot(h.reshape(H2 * W2, C1), wpw_ref[...],
                        preferred_element_type=jnp.float32)
            r = r.reshape(H2, W2, C2) + bpw_ref[...]

        o_ref[0] = r.astype(o_ref.dtype)

    return kernel


def dwsep_shortcut(x_nhwc, params, *, c1, c2, k=3, s=1, eps=1e-5):
    """DWSepShortcutLayer.forward. x_nhwc: (N, H, W, c1) float32, NHWC layout."""
    if c1 == c2 and s == 1:
        return x_nhwc                                        # nn.Identity branch

    N, H, W, C = x_nhwc.shape
    assert C == c1
    p = (k - 1) // 2                                         # 'same' (s=1) / (k-1)//2 (s>1)
    H2 = (H + 2 * p - k) // s + 1
    W2 = (W + 2 * p - k) // s + 1

    w_dw, b_dw = params["w_dw"], params["b_dw"]              # (k,k,c1), (c1,)
    w_pw, b_pw = params["w_pw"], params["b_pw"]              # (c1,c2), (c2,)
    bn1_g, bn1_b, bn1_m, bn1_v = params["bn1"]
    bn2_g, bn2_b, bn2_m, bn2_v = params["bn2"]

    # Fold inference-mode BatchNorm into the conv weights/biases (exact for eval mode).
    s1 = bn1_g / jnp.sqrt(bn1_v + eps)
    w_dw_f = (w_dw * s1[None, None, :]).astype(jnp.float32)
    b_dw_f = ((b_dw - bn1_m) * s1 + bn1_b).reshape(1, 1, c1).astype(jnp.float32)
    s2 = bn2_g / jnp.sqrt(bn2_v + eps)
    w_pw_f = (w_pw * s2[None, :]).astype(jnp.float32)
    b_pw_f = ((b_pw - bn2_m) * s2 + bn2_b).reshape(1, 1, c2).astype(jnp.float32)

    kernel = _make_dwsep_kernel(H, W, c1, c2, k, s, p)

    flops = 2 * N * H2 * W2 * (c1 * k * k + c1 * c2)
    bytes_accessed = (x_nhwc.size + N * H2 * W2 * c2) * 4 \
        + (w_dw_f.size + w_pw_f.size + c1 + c2) * 4

    return pl.pallas_call(
        kernel,
        out_shape=jax.ShapeDtypeStruct((N, H2, W2, c2), x_nhwc.dtype),
        grid_spec=pltpu.PrefetchScalarGridSpec(
            num_scalar_prefetch=0,
            grid=(N,),
            in_specs=[
                pl.BlockSpec((1, H, W, c1), lambda n: (n, 0, 0, 0)),   # one image / step
                pl.BlockSpec((k, k, c1), lambda n: (0, 0, 0)),         # dw weights (resident)
                pl.BlockSpec((1, 1, c1), lambda n: (0, 0, 0)),         # dw bias (+BN1)
                pl.BlockSpec((c1, c2), lambda n: (0, 0)),              # pw weights (resident)
                pl.BlockSpec((1, 1, c2), lambda n: (0, 0, 0)),         # pw bias (+BN2)
            ],
            out_specs=pl.BlockSpec((1, H2, W2, c2), lambda n: (n, 0, 0, 0)),
            scratch_shapes=[pltpu.VMEM((H + 2 * p, W + 2 * p, c1), jnp.float32)],
        ),
        compiler_params=pltpu.CompilerParams(
            dimension_semantics=("parallel",),
            vmem_limit_bytes=32 * 1024 * 1024,
        ),
        cost_estimate=pl.CostEstimate(
            flops=flops, transcendentals=0, bytes_accessed=bytes_accessed),
    )(x_nhwc, w_dw_f, b_dw_f, w_pw_f, b_pw_f)


def _reference(x, w_dw, b_dw, bn1, w_pw, b_pw, bn2, *, k, s, eps=1e-5):
    """Plain-JAX reference matching the PyTorch module (eval-mode BN), NHWC."""
    C1 = x.shape[-1]
    p = (k - 1) // 2
    y = jax.lax.conv_general_dilated(
        x, w_dw.reshape(k, k, 1, C1),
        window_strides=(s, s), padding=[(p, p), (p, p)],
        dimension_numbers=("NHWC", "HWIO", "NHWC"),
        feature_group_count=C1)
    y = y + b_dw
    g, b, m, v = bn1
    y = (y - m) / jnp.sqrt(v + eps) * g + b
    y = jnp.maximum(y, 0.0)
    z = jnp.einsum("nhwc,cd->nhwd", y, w_pw) + b_pw
    g, b, m, v = bn2
    z = (z - m) / jnp.sqrt(v + eps) * g + b
    return z


if __name__ == "__main__":
    N, C1, C2, H, W = 2, 4, 8, 16, 16
    K, S = 3, 1
    EPS = 1e-5

    key = jax.random.PRNGKey(0)
    ks = jax.random.split(key, 13)

    x = jax.random.normal(ks[0], (N, H, W, C1), dtype=jnp.float32)

    # Conv2d default init: U(-1/sqrt(fan_in), 1/sqrt(fan_in)).
    bound_dw = 1.0 / math.sqrt(1 * K * K)
    w_dw = jax.random.uniform(ks[1], (K, K, C1), jnp.float32, -bound_dw, bound_dw)
    b_dw = jax.random.uniform(ks[2], (C1,), jnp.float32, -bound_dw, bound_dw)
    bound_pw = 1.0 / math.sqrt(C1)
    w_pw = jax.random.uniform(ks[3], (C1, C2), jnp.float32, -bound_pw, bound_pw)
    b_pw = jax.random.uniform(ks[4], (C2,), jnp.float32, -bound_pw, bound_pw)

    # BatchNorm2d affine params + running stats (inference mode), non-trivial values.
    bn1 = (1.0 + 0.1 * jax.random.normal(ks[5], (C1,), jnp.float32),
           0.1 * jax.random.normal(ks[6], (C1,), jnp.float32),
           0.1 * jax.random.normal(ks[7], (C1,), jnp.float32),
           jax.random.uniform(ks[8], (C1,), jnp.float32, 0.5, 1.5))
    bn2 = (1.0 + 0.1 * jax.random.normal(ks[9], (C2,), jnp.float32),
           0.1 * jax.random.normal(ks[10], (C2,), jnp.float32),
           0.1 * jax.random.normal(ks[11], (C2,), jnp.float32),
           jax.random.uniform(ks[12], (C2,), jnp.float32, 0.5, 1.5))

    params = dict(w_dw=w_dw, b_dw=b_dw, w_pw=w_pw, b_pw=b_pw, bn1=bn1, bn2=bn2)

    # Non-identity branch (c1 != c2): DWSepConvLayer shortcut, fused Pallas kernel.
    out = dwsep_shortcut(x, params, c1=C1, c2=C2, k=K, s=S, eps=EPS)
    jax.block_until_ready(out)

    ref = _reference(x, w_dw, b_dw, bn1, w_pw, b_pw, bn2, k=K, s=S, eps=EPS)
    assert out.shape == ref.shape, (out.shape, ref.shape)
    assert jnp.allclose(out, ref, atol=1e-4, rtol=1e-4), "mismatch vs reference"

    # Identity branch (c1 == c2, s == 1): forward(x) = x, no kernel launched.
    out_id = dwsep_shortcut(x, None, c1=C1, c2=C1, k=K, s=1)
    assert jnp.allclose(out_id, x), "identity branch mismatch"

    print("KERNEL_OK")
</pallas_src>

<mosaic_0001>
module attributes {stable_mosaic.version = 11 : i64} {
  func.func @kernel(%arg0: i32, %arg1: memref<1x16x16x4xf32, #tpu.memory_space<vmem>>, %arg2: memref<3x3x4xf32, #tpu.memory_space<vmem>>, %arg3: memref<1x1x4xf32, #tpu.memory_space<vmem>>, %arg4: memref<4x8xf32, #tpu.memory_space<vmem>>, %arg5: memref<1x1x8xf32, #tpu.memory_space<vmem>>, %arg6: memref<1x16x16x8xf32, #tpu.memory_space<vmem>>, %arg7: memref<18x18x4xf32, #tpu.memory_space<vmem>>) attributes {dimension_semantics = [#tpu.dimension_semantics<parallel>], iteration_bounds = array<i64: 2>, scalar_prefetch = 0 : i64, scratch_operands = 1 : i64, tpu.core_type = #tpu.core_type<tc>, window_params = [{transform_indices = @transform_0, window_bounds = array<i64: 1, 16, 16, 4>}, {pipeline_mode = #tpu.pipeline_mode<synchronous>, transform_indices = @transform_1, window_bounds = array<i64: 3, 3, 4>}, {pipeline_mode = #tpu.pipeline_mode<synchronous>, transform_indices = @transform_2, window_bounds = array<i64: 1, 1, 4>}, {pipeline_mode = #tpu.pipeline_mode<synchronous>, transform_indices = @transform_3, window_bounds = array<i64: 4, 8>}, {pipeline_mode = #tpu.pipeline_mode<synchronous>, transform_indices = @transform_4, window_bounds = array<i64: 1, 1, 8>}, {transform_indices = @transform_5, window_bounds = array<i64: 1, 16, 16, 8>}]} {
    %cst = arith.constant 0.000000e+00 : f32
    %0 = vector.broadcast %cst : f32 to vector<18x18x4xf32>
    %c0 = arith.constant 0 : index
    %c0_0 = arith.constant 0 : index
    %c0_1 = arith.constant 0 : index
    %1 = vector.load %arg7[%c0, %c0_0, %c0_1] : memref<18x18x4xf32, #tpu.memory_space<vmem>>, vector<18x18x4xf32>
    tpu.vector_store %arg7[%c0, %c0_0, %c0_1], %0 {strides = array<i32>} : memref<18x18x4xf32, #tpu.memory_space<vmem>>, vector<18x18x4xf32>,
    %c0_2 = arith.constant 0 : index
    %c0_3 = arith.constant 0 : index
    %c0_4 = arith.constant 0 : index
    %c0_5 = arith.constant 0 : index
    %2 = vector.load %arg1[%c0_2, %c0_3, %c0_4, %c0_5] : memref<1x16x16x4xf32, #tpu.memory_space<vmem>>, vector<1x16x16x4xf32>
    %3 = vector.shape_cast %2 : vector<1x16x16x4xf32> to vector<16x16x4xf32>
    %c1 = arith.constant 1 : index
    %c1_6 = arith.constant 1 : index
    %c0_7 = arith.constant 0 : index
    %4 = vector.load %arg7[%c1, %c1_6, %c0_7] : memref<18x18x4xf32, #tpu.memory_space<vmem>>, vector<16x16x4xf32>
    tpu.vector_store %arg7[%c1, %c1_6, %c0_7], %3 {strides = array<i32>} : memref<18x18x4xf32, #tpu.memory_space<vmem>>, vector<16x16x4xf32>,
    %c0_8 = arith.constant 0 : index
    %c0_9 = arith.constant 0 : index
    %c0_10 = arith.constant 0 : index
    %5 = vector.load %arg2[%c0_8, %c0_9, %c0_10] : memref<3x3x4xf32, #tpu.memory_space<vmem>>, vector<3x3x4xf32>
    %cst_11 = arith.constant 0.000000e+00 : f32
    %6 = vector.broadcast %cst_11 : f32 to vector<16x16x4xf32>
    %c0_12 = arith.constant 0 : index
    %c0_13 = arith.constant 0 : index
    %c0_14 = arith.constant 0 : index
    %7 = vector.load %arg7[%c0_12, %c0_13, %c0_14] : memref<18x18x4xf32, #tpu.memory_space<vmem>>, vector<16x16x4xf32>
    %8 = vector.extract_strided_slice %5 {offsets = [0, 0, 0], sizes = [1, 1, 4], strides = [1, 1, 1]} : vector<3x3x4xf32> to vector<1x1x4xf32>
    %9 = vector.shape_cast %8 : vector<1x1x4xf32> to vector<4xf32>
    %10 = vector.shape_cast %9 : vector<4xf32> to vector<1x1x4xf32>
    %11 = vector.broadcast %10 : vector<1x1x4xf32> to vector<16x16x4xf32>
    %12 = arith.mulf %7, %11 : vector<16x16x4xf32>
    %13 = arith.addf %6, %12 : vector<16x16x4xf32>
    %c0_15 = arith.constant 0 : index
    %c1_16 = arith.constant 1 : index
    %c0_17 = arith.constant 0 : index
    %14 = vector.load %arg7[%c0_15, %c1_16, %c0_17] : memref<18x18x4xf32, #tpu.memory_space<vmem>>, vector<16x16x4xf32>
    %15 = vector.extract_strided_slice %5 {offsets = [0, 1, 0], sizes = [1, 1, 4], strides = [1, 1, 1]} : vector<3x3x4xf32> to vector<1x1x4xf32>
    %16 = vector.shape_cast %15 : vector<1x1x4xf32> to vector<4xf32>
    %17 = vector.shape_cast %16 : vector<4xf32> to vector<1x1x4xf32>
    %18 = vector.broadcast %17 : vector<1x1x4xf32> to vector<16x16x4xf32>
    %19 = arith.mulf %14, %18 : vector<16x16x4xf32>
    %20 = arith.addf %13, %19 : vector<16x16x4xf32>
    %c0_18 = arith.constant 0 : index
    %c2 = arith.constant 2 : index
    %c0_19 = arith.constant 0 : index
    %21 = vector.load %arg7[%c0_18, %c2, %c0_19] : memref<18x18x4xf32, #tpu.memory_space<vmem>>, vector<16x16x4xf32>
    %22 = vector.extract_strided_slice %5 {offsets = [0, 2, 0], sizes = [1, 1, 4], strides = [1, 1, 1]} : vector<3x3x4xf32> to vector<1x1x4xf32>
    %23 = vector.shape_cast %22 : vector<1x1x4xf32> to vector<4xf32>
    %24 = vector.shape_cast %23 : vector<4xf32> to vector<1x1x4xf32>
    %25 = vector.broadcast %24 : vector<1x1x4xf32> to vector<16x16x4xf32>
    %26 = arith.mulf %21, %25 : vector<16x16x4xf32>
    %27 = arith.addf %20, %26 : vector<16x16x4xf32>
    %c1_20 = arith.constant 1 : index
    %c0_21 = arith.constant 0 : index
    %c0_22 = arith.constant 0 : index
    %28 = vector.load %arg7[%c1_20, %c0_21, %c0_22] : memref<18x18x4xf32, #tpu.memory_space<vmem>>, vector<16x16x4xf32>
    %29 = vector.extract_strided_slice %5 {offsets = [1, 0, 0], sizes = [1, 1, 4], strides = [1, 1, 1]} : vector<3x3x4xf32> to vector<1x1x4xf32>
    %30 = vector.shape_cast %29 : vector<1x1x4xf32> to vector<4xf32>
    %31 = vector.shape_cast %30 : vector<4xf32> to vector<1x1x4xf32>
    %32 = vector.broadcast %31 : vector<1x1x4xf32> to vector<16x16x4xf32>
    %33 = arith.mulf %28, %32 : vector<16x16x4xf32>
    %34 = arith.addf %27, %33 : vector<16x16x4xf32>
    %c1_23 = arith.constant 1 : index
    %c1_24 = arith.constant 1 : index
    %c0_25 = arith.constant 0 : index
    %35 = vector.load %arg7[%c1_23, %c1_24, %c0_25] : memref<18x18x4xf32, #tpu.memory_space<vmem>>, vector<16x16x4xf32>
    %36 = vector.extract_strided_slice %5 {offsets = [1, 1, 0], sizes = [1, 1, 4], strides = [1, 1, 1]} : vector<3x3x4xf32> to vector<1x1x4xf32>
    %37 = vector.shape_cast %36 : vector<1x1x4xf32> to vector<4xf32>
    %38 = vector.shape_cast %37 : vector<4xf32> to vector<1x1x4xf32>
    %39 = vector.broadcast %38 : vector<1x1x4xf32> to vector<16x16x4xf32>
    %40 = arith.mulf %35, %39 : vector<16x16x4xf32>
    %41 = arith.addf %34, %40 : vector<16x16x4xf32>
    %c1_26 = arith.constant 1 : index
    %c2_27 = arith.constant 2 : index
    %c0_28 = arith.constant 0 : index
    %42 = vector.load %arg7[%c1_26, %c2_27, %c0_28] : memref<18x18x4xf32, #tpu.memory_space<vmem>>, vector<16x16x4xf32>
    %43 = vector.extract_strided_slice %5 {offsets = [1, 2, 0], sizes = [1, 1, 4], strides = [1, 1, 1]} : vector<3x3x4xf32> to vector<1x1x4xf32>
    %44 = vector.shape_cast %43 : vector<1x1x4xf32> to vector<4xf32>
    %45 = vector.shape_cast %44 : vector<4xf32> to vector<1x1x4xf32>
    %46 = vector.broadcast %45 : vector<1x1x4xf32> to vector<16x16x4xf32>
    %47 = arith.mulf %42, %46 : vector<16x16x4xf32>
    %48 = arith.addf %41, %47 : vector<16x16x4xf32>
    %c2_29 = arith.constant 2 : index
    %c0_30 = arith.constant 0 : index
    %c0_31 = arith.constant 0 : index
    %49 = vector.load %arg7[%c2_29, %c0_30, %c0_31] : memref<18x18x4xf32, #tpu.memory_space<vmem>>, vector<16x16x4xf32>
    %50 = vector.extract_strided_slice %5 {offsets = [2, 0, 0], sizes = [1, 1, 4], strides = [1, 1, 1]} : vector<3x3x4xf32> to vector<1x1x4xf32>
    %51 = vector.shape_cast %50 : vector<1x1x4xf32> to vector<4xf32>
    %52 = vector.shape_cast %51 : vector<4xf32> to vector<1x1x4xf32>
    %53 = vector.broadcast %52 : vector<1x1x4xf32> to vector<16x16x4xf32>
    %54 = arith.mulf %49, %53 : vector<16x16x4xf32>
    %55 = arith.addf %48, %54 : vector<16x16x4xf32>
    %c2_32 = arith.constant 2 : index
    %c1_33 = arith.constant 1 : index
    %c0_34 = arith.constant 0 : index
    %56 = vector.load %arg7[%c2_32, %c1_33, %c0_34] : memref<18x18x4xf32, #tpu.memory_space<vmem>>, vector<16x16x4xf32>
    %57 = vector.extract_strided_slice %5 {offsets = [2, 1, 0], sizes = [1, 1, 4], strides = [1, 1, 1]} : vector<3x3x4xf32> to vector<1x1x4xf32>
    %58 = vector.shape_cast %57 : vector<1x1x4xf32> to vector<4xf32>
    %59 = vector.shape_cast %58 : vector<4xf32> to vector<1x1x4xf32>
    %60 = vector.broadcast %59 : vector<1x1x4xf32> to vector<16x16x4xf32>
    %61 = arith.mulf %56, %60 : vector<16x16x4xf32>
    %62 = arith.addf %55, %61 : vector<16x16x4xf32>
    %c2_35 = arith.constant 2 : index
    %c2_36 = arith.constant 2 : index
    %c0_37 = arith.constant 0 : index
    %63 = vector.load %arg7[%c2_35, %c2_36, %c0_37] : memref<18x18x4xf32, #tpu.memory_space<vmem>>, vector<16x16x4xf32>
    %64 = vector.extract_strided_slice %5 {offsets = [2, 2, 0], sizes = [1, 1, 4], strides = [1, 1, 1]} : vector<3x3x4xf32> to vector<1x1x4xf32>
    %65 = vector.shape_cast %64 : vector<1x1x4xf32> to vector<4xf32>
    %66 = vector.shape_cast %65 : vector<4xf32> to vector<1x1x4xf32>
    %67 = vector.broadcast %66 : vector<1x1x4xf32> to vector<16x16x4xf32>
    %68 = arith.mulf %63, %67 : vector<16x16x4xf32>
    %69 = arith.addf %62, %68 : vector<16x16x4xf32>
    %c0_38 = arith.constant 0 : index
    %c0_39 = arith.constant 0 : index
    %c0_40 = arith.constant 0 : index
    %70 = vector.load %arg3[%c0_38, %c0_39, %c0_40] : memref<1x1x4xf32, #tpu.memory_space<vmem>>, vector<1x1x4xf32>
    %71 = vector.broadcast %70 : vector<1x1x4xf32> to vector<16x16x4xf32>
    %72 = arith.addf %69, %71 : vector<16x16x4xf32>
    %cst_41 = arith.constant 0.000000e+00 : f32
    %73 = vector.broadcast %cst_41 : f32 to vector<16x16x4xf32>
    %74 = arith.maximumf %72, %73 : vector<16x16x4xf32>
    %c0_42 = arith.constant 0 : index
    %c0_43 = arith.constant 0 : index
    %75 = vector.load %arg4[%c0_42, %c0_43] : memref<4x8xf32, #tpu.memory_space<vmem>>, vector<4x8xf32>
    %cst_44 = arith.constant 0.000000e+00 : f32
    %76 = vector.broadcast %cst_44 : f32 to vector<16x16x8xf32>
    %c0_45 = arith.constant 0 : index
    %c0_46 = arith.constant 0 : index
    %c0_47 = arith.constant 0 : index
    %77 = vector.load %arg5[%c0_45, %c0_46, %c0_47] : memref<1x1x8xf32, #tpu.memory_space<vmem>>, vector<1x1x8xf32>
    %78 = vector.broadcast %77 : vector<1x1x8xf32> to vector<16x16x8xf32>
    %79 = arith.addf %76, %78 : vector<16x16x8xf32>
    %80 = vector.extract_strided_slice %74 {offsets = [0, 0, 0], sizes = [16, 16, 1], strides = [1, 1, 1]} : vector<16x16x4xf32> to vector<16x16x1xf32>
    %81 = vector.extract_strided_slice %75 {offsets = [0, 0], sizes = [1, 8], strides = [1, 1]} : vector<4x8xf32> to vector<1x8xf32>
    %82 = vector.shape_cast %81 : vector<1x8xf32> to vector<8xf32>
    %83 = vector.shape_cast %82 : vector<8xf32> to vector<1x1x8xf32>
    %84 = vector.broadcast %80 : vector<16x16x1xf32> to vector<16x16x8xf32>
    %85 = vector.broadcast %83 : vector<1x1x8xf32> to vector<16x16x8xf32>
    %86 = arith.mulf %84, %85 : vector<16x16x8xf32>
    %87 = arith.addf %79, %86 : vector<16x16x8xf32>
    %88 = vector.extract_strided_slice %74 {offsets = [0, 0, 1], sizes = [16, 16, 1], strides = [1, 1, 1]} : vector<16x16x4xf32> to vector<16x16x1xf32>
    %89 = vector.extract_strided_slice %75 {offsets = [1, 0], sizes = [1, 8], strides = [1, 1]} : vector<4x8xf32> to vector<1x8xf32>
    %90 = vector.shape_cast %89 : vector<1x8xf32> to vector<8xf32>
    %91 = vector.shape_cast %90 : vector<8xf32> to vector<1x1x8xf32>
    %92 = vector.broadcast %88 : vector<16x16x1xf32> to vector<16x16x8xf32>
    %93 = vector.broadcast %91 : vector<1x1x8xf32> to vector<16x16x8xf32>
    %94 = arith.mulf %92, %93 : vector<16x16x8xf32>
    %95 = arith.addf %87, %94 : vector<16x16x8xf32>
    %96 = vector.extract_strided_slice %74 {offsets = [0, 0, 2], sizes = [16, 16, 1], strides = [1, 1, 1]} : vector<16x16x4xf32> to vector<16x16x1xf32>
    %97 = vector.extract_strided_slice %75 {offsets = [2, 0], sizes = [1, 8], strides = [1, 1]} : vector<4x8xf32> to vector<1x8xf32>
    %98 = vector.shape_cast %97 : vector<1x8xf32> to vector<8xf32>
    %99 = vector.shape_cast %98 : vector<8xf32> to vector<1x1x8xf32>
    %100 = vector.broadcast %96 : vector<16x16x1xf32> to vector<16x16x8xf32>
    %101 = vector.broadcast %99 : vector<1x1x8xf32> to vector<16x16x8xf32>
    %102 = arith.mulf %100, %101 : vector<16x16x8xf32>
    %103 = arith.addf %95, %102 : vector<16x16x8xf32>
    %104 = vector.extract_strided_slice %74 {offsets = [0, 0, 3], sizes = [16, 16, 1], strides = [1, 1, 1]} : vector<16x16x4xf32> to vector<16x16x1xf32>
    %105 = vector.extract_strided_slice %75 {offsets = [3, 0], sizes = [1, 8], strides = [1, 1]} : vector<4x8xf32> to vector<1x8xf32>
    %106 = vector.shape_cast %105 : vector<1x8xf32> to vector<8xf32>
    %107 = vector.shape_cast %106 : vector<8xf32> to vector<1x1x8xf32>
    %108 = vector.broadcast %104 : vector<16x16x1xf32> to vector<16x16x8xf32>
    %109 = vector.broadcast %107 : vector<1x1x8xf32> to vector<16x16x8xf32>
    %110 = arith.mulf %108, %109 : vector<16x16x8xf32>
    %111 = arith.addf %103, %110 : vector<16x16x8xf32>
    %c0_48 = arith.constant 0 : index
    %c0_49 = arith.constant 0 : index
    %c0_50 = arith.constant 0 : index
    %c0_51 = arith.constant 0 : index
    %112 = vector.load %arg6[%c0_48, %c0_49, %c0_50, %c0_51] : memref<1x16x16x8xf32, #tpu.memory_space<vmem>>, vector<1x16x16x8xf32>
    %113 = vector.shape_cast %112 : vector<1x16x16x8xf32> to vector<16x16x8xf32>
    %114 = vector.shape_cast %111 : vector<16x16x8xf32> to vector<1x16x16x8xf32>
    tpu.vector_store %arg6[%c0_48, %c0_49, %c0_50, %c0_51], %114 {strides = array<i32>} : memref<1x16x16x8xf32, #tpu.memory_space<vmem>>, vector<1x16x16x8xf32>,
    return
  }
  func.func @transform_0(%arg0: i32) -> (i32, i32, i32, i32) {
    %c0_i32 = arith.constant 0 : i32
    %c0_i32_0 = arith.constant 0 : i32
    %c0_i32_1 = arith.constant 0 : i32
    %c0_i32_2 = arith.constant 0 : i32
    return %arg0, %c0_i32, %c0_i32_0, %c0_i32_1 : i32, i32, i32, i32
  }
  func.func @transform_1(%arg0: i32) -> (i32, i32, i32) {
    %c0_i32 = arith.constant 0 : i32
    %c0_i32_0 = arith.constant 0 : i32
    %c0_i32_1 = arith.constant 0 : i32
    %c0_i32_2 = arith.constant 0 : i32
    return %c0_i32, %c0_i32_0, %c0_i32_1 : i32, i32, i32
  }
  func.func @transform_2(%arg0: i32) -> (i32, i32, i32) {
    %c0_i32 = arith.constant 0 : i32
    %c0_i32_0 = arith.constant 0 : i32
    %c0_i32_1 = arith.constant 0 : i32
    %c0_i32_2 = arith.constant 0 : i32
    return %c0_i32, %c0_i32_0, %c0_i32_1 : i32, i32, i32
  }
  func.func @transform_3(%arg0: i32) -> (i32, i32) {
    %c0_i32 = arith.constant 0 : i32
    %c0_i32_0 = arith.constant 0 : i32
    %c0_i32_1 = arith.constant 0 : i32
    return %c0_i32, %c0_i32_0 : i32, i32
  }
  func.func @transform_4(%arg0: i32) -> (i32, i32, i32) {
    %c0_i32 = arith.constant 0 : i32
    %c0_i32_0 = arith.constant 0 : i32
    %c0_i32_1 = arith.constant 0 : i32
    %c0_i32_2 = arith.constant 0 : i32
    return %c0_i32, %c0_i32_0, %c0_i32_1 : i32, i32, i32
  }
  func.func @transform_5(%arg0: i32) -> (i32, i32, i32, i32) {
    %c0_i32 = arith.constant 0 : i32
    %c0_i32_0 = arith.constant 0 : i32
    %c0_i32_1 = arith.constant 0 : i32
    %c0_i32_2 = arith.constant 0 : i32
    return %arg0, %c0_i32, %c0_i32_0, %c0_i32_1 : i32, i32, i32, i32
  }
}

</mosaic_0001>

<bundles_post_ra>
// kernel: tpu_custom_call.1
= control target key start
LH: loop header
LB: loop body
LE: loop exit
PB: predicated region body
PF: predicated region fallthrough
CT: control target
= control target key end

     0   :  { %s2273_s18 = smov 0   ;;  %s3827_s0 = inlined_call_operand.vmem [shape: f32[2,16,16,4], index: 0, kind: input, shape index: {}]   ;;  %s3828_s1 = inlined_call_operand.vmem [shape: f32[3,3,4], index: 1, kind: input, shape index: {}]   ;;  %s3829_s2 = inlined_call_operand.vmem [shape: f32[1,1,4], index: 2, kind: input, shape index: {}]   ;;  %s3830_s3 = inlined_call_operand.vmem [shape: f32[4,8], index: 3, kind: input, shape index: {}]   ;;  %s3831_s4 = inlined_call_operand.vmem [shape: f32[1,1,8], index: 4, kind: input, shape index: {}]   ;;  %s3832_s5 = inlined_call_operand.vmem [shape: f32[2,16,16,8], index: 5, kind: output, shape index: {}]  }
   0x1 LB: > { %s2189_s19 = sadd.s32 4294967295, %s2236_s18   ;;  %p2193_p0 = scmp.ge.s32.totalorder %s2236_s18, 1  ;;  %s2236_s18 = sphi %s2273_s18, %s15_s18  }
   0x2   : > { %p187_p1 = scmp.lt.s32.totalorder %s2236_s18, 3 }
   0x4   : > { %p188_p2 = pnand %p2193_p0, %p187_p1 }
   0x6   : > { %191 = sbr.rel (%p188_p2) target bundleno = 616 (0x268), region = 40 }
   0xb   : > { %p215_p3 = scmp.lt.s32.totalorder %s2189_s19, 1  ;;  %vm225_vm0 = vcmask 31744   ;;  %v2238_v0 = vmov 0   ;;  %v2239_v1 = vmov 0.0   ;;  %vm228_vm1 = vcmask 25600  }
   0xc   : > { %2215 = vset.pattern.permute.xlu0 %v2238_v0  ;;  %226 = vst.msk [vmem:[#allocation2] sm:$0xff] %vm225_vm0, %v2239_v1  ;;  %2217 = vset.pattern.permute.xlu2 %v2238_v0  ;;  %v346_v2 = vld [vmem:[%s3828_s1] sm:$0x7]  ;;  %v347_v14 = vld [vmem:[%s3828_s1 + $0x4] sm:$0x7]  ;;  %vm2101_vm2 = vcmask 64512  }
   0xd   : > { %s3916_s19 = smov (!%p215_p3, %s2189_s19), 1  ;;  %227 = vst.msk [vmem:[#allocation2 + $0x8] sm:$0xff] %vm225_vm0, %v2239_v1  ;;  %2216 = vset.pattern.permute.xlu1 %v2238_v0  ;;  %v2304_v3 = vperm.slane %v346_v2, 0  ;;  %v2309_v5 = vperm.slane %v346_v2, 1  ;;  %v2314_v7 = vperm.slane %v346_v2, 2  ;;  %v2330_v18 = vperm.slane %v347_v14, 0 }
   0xe   : > { %230 = vst.msk [vmem:[#allocation2 + $0x18] sm:$0xff] %vm225_vm0, %v2239_v1  ;;  %s2200_s22 = sshll.u32 %s3916_s19, 8  ;;  %v2332_v19 = vperm.slane %v347_v14, 1  ;;  %v348_v20 = vld [vmem:[%s3828_s1 + $0x8] sm:$0x7]  ;;  %v2341_v22 = vperm.slane %v347_v14, 2 }
   0xf   : > { %231 = vst.msk [vmem:[#allocation2 + $0x20] sm:$0xff] %vm225_vm0, %v2239_v1  ;;  %s2300_s25 = scalar_lea.vmem %s3827_s0, %s2200_s22  ;;  %v2355_v27 = vperm.slane %v348_v20, 0  ;;  %v2365_v31 = vperm.slane %v348_v20, 1  ;;  %v2375_v35 = vperm.slane %v348_v20, 2  ;;  %v2400_v43 = vld [vmem:[%s3829_s2] ss:$0 sm:$0xff]  ;;  %s3671_s15 = scalar_lea.vmem %s3832_s5, %s2200_s22 }
  0x10   : > { %232 = vst.msk [vmem:[#allocation2 + $0x28] sm:$0x3] %vm228_vm1, %v2239_v1  ;;  %v281_v4 = vld [vmem:[%s2300_s25] sm:$0xff]  ;;  %v282_v6 = vld [vmem:[%s2300_s25 + $0x8] sm:$0xff]  ;;  %v283_v8 = vld [vmem:[%s2300_s25 + $0x10] sm:$0xff] }
  0x11   : > { %233 = vst.msk [vmem:[#allocation2 + $0x30] sm:$0xff] %vm225_vm0, %v2239_v1  ;;  %v284_v9 = vld [vmem:[%s2300_s25 + $0x18] sm:$0xff] }
  0x12   : > { %234 = vst.msk [vmem:[#allocation2 + $0x38] sm:$0xff] %vm225_vm0, %v2239_v1 }
  0x13   : > { %235 = vst.msk [vmem:[#allocation2 + $0x40] sm:$0x3] %vm228_vm1, %v2239_v1  ;;  %v349_v10 = vld [vmem:[#allocation2] sm:$0xff] }
  0x14   : > { %314 = vst.msk [vmem:[#allocation2 + $0x19] sm:$0xff] %vm225_vm0, %v281_v4  ;;  %v382_v11 = vmul.f32 %v2304_v3, %v349_v10  ;;  %v446_v12 = vld [vmem:[#allocation2 + $0x1] sm:$0xff] }
  0x15   : > { %v543_v13 = vld [vmem:[#allocation2 + $0x2] sm:$0xff]  ;;  %315 = vst.msk [vmem:[#allocation2 + $0x21] sm:$0xff] %vm225_vm0, %v282_v6  ;;  %v479_v15 = vmul.f32 %v2309_v5, %v446_v12 }
  0x16   : > { %316 = vst.msk [vmem:[#allocation2 + $0x31] sm:$0xff] %vm225_vm0, %v283_v8  ;;  %v576_v16 = vmul.f32 %v2314_v7, %v543_v13  ;;  %v350_v47 = vld [vmem:[#allocation2 + $0x8] sm:$0xff] }
  0x17   : > { %317 = vst.msk [vmem:[#allocation2 + $0x39] sm:$0xff] %vm225_vm0, %v284_v9  ;;  %v511_v17 = vadd.f32 %v479_v15, %v382_v11  ;;  %v383_v49 = vmul.f32 %v2304_v3, %v350_v47 }
  0x18   : > { %229 = vst.msk [vmem:[#allocation2 + $0x10] sm:$0x3] %vm228_vm1, %v2239_v1 }
  0x19   : > { %236 = vst.msk [vmem:[#allocation2 + $0x48] sm:$0xff] %vm225_vm0, %v2239_v1  ;;  %v608_v21 = vadd.f32 %v576_v16, %v511_v17 }
  0x1a   : > { %237 = vst.msk [vmem:[#allocation2 + $0x50] sm:$0xff] %vm225_vm0, %v2239_v1 }
  0x1b   : > { %v2345_v23 = vld [vmem:[#allocation2 + $0x18] sm:$0xff]  ;;  %238 = vst.msk [vmem:[#allocation2 + $0x58] sm:$0x3] %vm228_vm1, %v2239_v1 }
  0x1c   : > { %v2347_v24 = vld [vmem:[#allocation2 + $0x19] sm:$0xff]  ;;  %v673_v25 = vmul.f32 %v2330_v18, %v2345_v23  ;;  %239 = vst.msk [vmem:[#allocation2 + $0x60] sm:$0xff] %vm225_vm0, %v2239_v1  ;;  %v738_v57 = vld [vmem:[#allocation2 + $0x21] sm:$0xff]  ;;  %v384_v0 = vmul.f32 %v2345_v23, %v2304_v3 }
  0x1d   : > { %v770_v26 = vmul.f32 %v2332_v19, %v2347_v24  ;;  %v2359_v28 = vld [vmem:[#allocation2 + $0x1a] sm:$0xff]  ;;  %240 = vst.msk [vmem:[#allocation2 + $0x68] sm:$0xff] %vm225_vm0, %v2239_v1  ;;  %v2369_v32 = vld [vmem:[#allocation2 + $0x30] sm:$0xff]  ;;  %v771_v58 = vmul.f32 %v2332_v19, %v738_v57  ;;  %v835_v60 = vld [vmem:[#allocation2 + $0x22] sm:$0xff]  ;;  %v481_v2 = vmul.f32 %v2347_v24, %v2309_v5  ;;  %v482_v13 = vmul.f32 %v738_v57, %v2309_v5 }
  0x1e   : > { %v705_v29 = vadd.f32 %v673_v25, %v608_v21  ;;  %v867_v30 = vmul.f32 %v2341_v22, %v2359_v28  ;;  %241 = vst.msk [vmem:[#allocation2 + $0x70] sm:$0x3] %vm228_vm1, %v2239_v1  ;;  %v965_v34 = vmul.f32 %v2355_v27, %v2369_v32  ;;  %v2379_v36 = vld [vmem:[#allocation2 + $0x31] sm:$0xff]  ;;  %v641_v54 = vld [vmem:[#allocation2 + $0x20] sm:$0xff]  ;;  %v868_v61 = vmul.f32 %v2341_v22, %v835_v60 }
  0x1f   : > { %242 = vst.msk [vmem:[#allocation2 + $0x78] sm:$0xff] %vm225_vm0, %v2239_v1  ;;  %v1062_v38 = vmul.f32 %v2365_v31, %v2379_v36  ;;  %v2387_v39 = vld [vmem:[#allocation2 + $0x32] sm:$0xff]  ;;  %v447_v48 = vld [vmem:[#allocation2 + $0x9] sm:$0xff]  ;;  %v674_v55 = vmul.f32 %v2330_v18, %v641_v54  ;;  %v1127_v11 = vld [vmem:[#allocation2 + $0x3a] sm:$0xff]  ;;  %v385_v12 = vmul.f32 %v641_v54, %v2304_v3  ;;  %v513_v14 = vadd.f32 %v481_v2, %v384_v0 }
  0x20   : > { %v802_v33 = vadd.f32 %v770_v26, %v705_v29  ;;  %243 = vst.msk [vmem:[#allocation2 + $0x80] sm:$0xff] %vm225_vm0, %v2239_v1  ;;  %v1159_v41 = vmul.f32 %v2375_v35, %v2387_v39  ;;  %v480_v50 = vmul.f32 %v2309_v5, %v447_v48  ;;  %v544_v51 = vld [vmem:[#allocation2 + $0xa] sm:$0xff]  ;;  %v933_v63 = vld [vmem:[#allocation2 + $0x38] sm:$0xff]  ;;  %v578_v15 = vmul.f32 %v2359_v28, %v2314_v7  ;;  %v285_v28 = vld [vmem:[%s2300_s25 + $0x20] sm:$0xff] }
  0x21   : > { %244 = vst.msk [vmem:[#allocation2 + $0x88] sm:$0x3] %vm228_vm1, %v2239_v1  ;;  %v577_v52 = vmul.f32 %v2314_v7, %v544_v51  ;;  %v966_v4 = vmul.f32 %v2355_v27, %v933_v63  ;;  %v1030_v8 = vld [vmem:[#allocation2 + $0x39] sm:$0xff]  ;;  %v1160_v16 = vmul.f32 %v2375_v35, %v1127_v11  ;;  %v514_v21 = vadd.f32 %v482_v13, %v385_v12 }
  0x22   : > { %v899_v37 = vadd.f32 %v867_v30, %v802_v33  ;;  %245 = vst.msk [vmem:[#allocation2 + $0x90] sm:$0xff] %vm225_vm0, %v2239_v1  ;;  %v512_v53 = vadd.f32 %v480_v50, %v383_v49  ;;  %v1063_v9 = vmul.f32 %v2365_v31, %v1030_v8  ;;  %v579_v23 = vmul.f32 %v835_v60, %v2314_v7  ;;  %v289_v48 = vld [vmem:[%s2300_s25 + $0x40] sm:$0xff] }
  0x23   : > { %246 = vst.msk [vmem:[#allocation2 + $0x98] sm:$0xff] %vm225_vm0, %v2239_v1  ;;  %v610_v24 = vadd.f32 %v578_v15, %v513_v14  ;;  %v675_v25 = vmul.f32 %v2369_v32, %v2330_v18  ;;  %v676_v33 = vmul.f32 %v933_v63, %v2330_v18  ;;  %v580_v49 = vmul.f32 %v2387_v39, %v2314_v7 }
  0x24   : > { %v997_v40 = vadd.f32 %v965_v34, %v899_v37  ;;  %247 = vst.msk [vmem:[#allocation2 + $0xa0] sm:$0x3] %vm228_vm1, %v2239_v1  ;;  %v609_v56 = vadd.f32 %v577_v52, %v512_v53  ;;  %v611_v30 = vadd.f32 %v579_v23, %v514_v21  ;;  %v286_v34 = vld [vmem:[%s2300_s25 + $0x28] sm:$0xff]  ;;  %v386_v37 = vmul.f32 %v2369_v32, %v2304_v3  ;;  %v288_v32 = vld [vmem:[%s2300_s25 + $0x38] sm:$0xff] }
  0x25   : > { %248 = vst.msk [vmem:[#allocation2 + $0xa8] sm:$0xff] %vm225_vm0, %v2239_v1  ;;  %v869_v51 = vmul.f32 %v2387_v39, %v2341_v22  ;;  %v290_v52 = vld [vmem:[%s2300_s25 + $0x48] sm:$0xff]  ;;  %v581_v54 = vmul.f32 %v1127_v11, %v2314_v7 }
  0x26   : > { %v1094_v42 = vadd.f32 %v1062_v38, %v997_v40  ;;  %249 = vst.msk [vmem:[#allocation2 + $0xb0] sm:$0xff] %vm225_vm0, %v2239_v1  ;;  %v706_v59 = vadd.f32 %v674_v55, %v609_v56  ;;  %v483_v38 = vmul.f32 %v2379_v36, %v2309_v5  ;;  %v707_v40 = vadd.f32 %v675_v25, %v610_v24  ;;  %v291_v55 = vld [vmem:[%s2300_s25 + $0x50] sm:$0xff]  ;;  %v292_v56 = vld [vmem:[%s2300_s25 + $0x58] sm:$0xff]  ;;  %v294_v39 = vld [vmem:[%s2300_s25 + $0x68] sm:$0xff] }
  0x27   : > { %250 = vst.msk [vmem:[#allocation2 + $0xb8] sm:$0x3] %vm228_vm1, %v2239_v1  ;;  %v708_v47 = vadd.f32 %v676_v33, %v611_v30 }
  0x28   : > { %v1191_v44 = vadd.f32 %v1159_v41, %v1094_v42  ;;  %251 = vst.msk [vmem:[#allocation2 + $0xc0] sm:$0xff] %vm225_vm0, %v2239_v1  ;;  %v803_v62 = vadd.f32 %v771_v58, %v706_v59  ;;  %v772_v41 = vmul.f32 %v2379_v36, %v2332_v19  ;;  %v287_v42 = vld [vmem:[%s2300_s25 + $0x30] sm:$0xff]  ;;  %v773_v36 = vmul.f32 %v1030_v8, %v2332_v19  ;;  %v293_v59 = vld [vmem:[%s2300_s25 + $0x60] sm:$0xff] }
  0x29   : > { %252 = vst.msk [vmem:[#allocation2 + $0xc8] sm:$0xff] %vm225_vm0, %v2239_v1  ;;  %v870_v58 = vmul.f32 %v1127_v11, %v2341_v22 }
  0x2a   : > { %v1227_v45 = vadd.f32 %v2400_v43, %v1191_v44  ;;  %253 = vst.msk [vmem:[#allocation2 + $0xd0] sm:$0x3] %vm228_vm1, %v2239_v1  ;;  %v900_v6 = vadd.f32 %v868_v61, %v803_v62  ;;  %v387_v44 = vmul.f32 %v933_v63, %v2304_v3  ;;  %v804_v50 = vadd.f32 %v772_v41, %v707_v40 }
  0x2b   : > { %254 = vst.msk [vmem:[#allocation2 + $0xd8] sm:$0xff] %vm225_vm0, %v2239_v1  ;;  %v805_v57 = vadd.f32 %v773_v36, %v708_v47 }
  0x2c   : > { %v2415_v46 = vmax.f32 %v1227_v45, 0.0  ;;  %255 = vst.msk [vmem:[#allocation2 + $0xe0] sm:$0xff] %vm225_vm0, %v2239_v1  ;;  %v998_v10 = vadd.f32 %v966_v4, %v900_v6  ;;  %v484_v45 = vmul.f32 %v1030_v8, %v2309_v5  ;;  %v901_v61 = vadd.f32 %v869_v51, %v804_v50 }
  0x2d   : > { %256 = vst.msk [vmem:[#allocation2 + $0xe8] sm:$0x3] %vm228_vm1, %v2239_v1 }
  0x2e   : > { %3861 = vst [vmem:[#allocation3_spill] sm:$0xff] %v2415_v46  ;;  %1299 = vperm.xlu0 %2215, %v2415_v46   ;;  %v1095_v17 = vadd.f32 %v1063_v9, %v998_v10  ;;  %v516_v53 = vadd.f32 %v484_v45, %v387_v44 }
  0x2f   : > { %257 = vst.msk [vmem:[#allocation2 + $0xf0] sm:$0xff] %vm225_vm0, %v2239_v1 }
  0x30   : > { %258 = vst.msk [vmem:[#allocation2 + $0xf8] sm:$0xff] %vm225_vm0, %v2239_v1  ;;  %v1192_v20 = vadd.f32 %v1160_v16, %v1095_v17  ;;  %v613_v0 = vadd.f32 %v581_v54, %v516_v53  ;;  %v902_v17 = vadd.f32 %v870_v58, %v805_v57 }
  0x31   : > { %259 = vst.msk [vmem:[#allocation2 + $0x100] sm:$0x3] %vm228_vm1, %v2239_v1 }
  0x32   : > { %260 = vst.msk [vmem:[#allocation2 + $0x108] sm:$0xff] %vm225_vm0, %v2239_v1  ;;  %v1228_v26 = vadd.f32 %v2400_v43, %v1192_v20 }
  0x33   : > { %261 = vst.msk [vmem:[#allocation2 + $0x110] sm:$0xff] %vm225_vm0, %v2239_v1 }
  0x34   : > { %262 = vst.msk [vmem:[#allocation2 + $0x118] sm:$0x3] %vm228_vm1, %v2239_v1  ;;  %v2488_v29 = vmax.f32 %v1228_v26, 0.0 }
  0x35   : > { %263 = vst.msk [vmem:[#allocation2 + $0x120] sm:$0xff] %vm225_vm0, %v2239_v1 }
  0x36   : > { %264 = vst.msk [vmem:[#allocation2 + $0x128] sm:$0xff] %vm225_vm0, %v2239_v1  ;;  %1304 = vperm.xlu0 %2215, %v2488_v29  }
  0x37   : > { %265 = vst.msk [vmem:[#allocation2 + $0x130] sm:$0x3] %vm228_vm1, %v2239_v1 }
  0x38   : > { %266 = vst.msk [vmem:[#allocation2 + $0x138] sm:$0xff] %vm225_vm0, %v2239_v1 }
  0x39   : > { %267 = vst.msk [vmem:[#allocation2 + $0x140] sm:$0xff] %vm225_vm0, %v2239_v1 }
  0x3a   : > { %268 = vst.msk [vmem:[#allocation2 + $0x148] sm:$0x3] %vm228_vm1, %v2239_v1 }
  0x3b   : > { %269 = vst.msk [vmem:[#allocation2 + $0x150] sm:$0xff] %vm225_vm0, %v2239_v1 }
  0x3c   : > { %270 = vst.msk [vmem:[#allocation2 + $0x158] sm:$0xff] %vm225_vm0, %v2239_v1 }
  0x3d   : > { %271 = vst.msk [vmem:[#allocation2 + $0x160] sm:$0x3] %vm228_vm1, %v2239_v1 }
  0x3e   : > { %272 = vst.msk [vmem:[#allocation2 + $0x168] sm:$0xff] %vm225_vm0, %v2239_v1 }
  0x3f   : > { %273 = vst.msk [vmem:[#allocation2 + $0x170] sm:$0xff] %vm225_vm0, %v2239_v1 }
  0x40   : > { %274 = vst.msk [vmem:[#allocation2 + $0x178] sm:$0x3] %vm228_vm1, %v2239_v1 }
  0x41   : > { %275 = vst.msk [vmem:[#allocation2 + $0x180] sm:$0xff] %vm225_vm0, %v2239_v1 }
  0x42   : > { %276 = vst.msk [vmem:[#allocation2 + $0x188] sm:$0xff] %vm225_vm0, %v2239_v1 }
  0x43   : > { %277 = vst.msk [vmem:[#allocation2 + $0x190] sm:$0x3] %vm228_vm1, %v2239_v1 }
  0x44   : > { %278 = vst.msk [vmem:[#allocation2 + $0x198] sm:$0xff] %vm225_vm0, %v2239_v1 }
  0x45   : > { %3862 = vst [vmem:[#allocation4_spill] sm:$0xff] %v2488_v29 }
  0x46   : > { %279 = vst.msk [vmem:[#allocation2 + $0x1a0] sm:$0xff] %vm225_vm0, %v2239_v1 }
  0x47   : > { %280 = vst.msk [vmem:[#allocation2 + $0x1a8] sm:$0x3] %vm228_vm1, %v2239_v1  ;;  %v515_v1 = vadd.f32 %v483_v38, %v386_v37 }
  0x48   : > { %318 = vst.msk [vmem:[#allocation2 + $0x49] sm:$0xff] %vm225_vm0, %v285_v28 }
  0x49   : > { %319 = vst.msk [vmem:[#allocation2 + $0x51] sm:$0xff] %vm225_vm0, %v286_v34  ;;  %v612_v60 = vadd.f32 %v580_v49, %v515_v1 }
  0x4a   : > { %320 = vst.msk [vmem:[#allocation2 + $0x61] sm:$0xff] %vm225_vm0, %v287_v42 }
  0x4b   : > { %321 = vst.msk [vmem:[#allocation2 + $0x69] sm:$0xff] %vm225_vm0, %v288_v32 }
  0x4c   : > { %322 = vst.msk [vmem:[#allocation2 + $0x79] sm:$0xff] %vm225_vm0, %v289_v48 }
  0x4d   : > { %323 = vst.msk [vmem:[#allocation2 + $0x81] sm:$0xff] %vm225_vm0, %v290_v52 }
  0x4e   : > { %324 = vst.msk [vmem:[#allocation2 + $0x91] sm:$0xff] %vm225_vm0, %v291_v55 }
  0x4f   : > { %v644_v62 = vld [vmem:[#allocation2 + $0x48] sm:$0xff]  ;;  %325 = vst.msk [vmem:[#allocation2 + $0x99] sm:$0xff] %vm225_vm0, %v292_v56 }
  0x50   : > { %v741_v63 = vld [vmem:[#allocation2 + $0x49] sm:$0xff]  ;;  %v677_v2 = vmul.f32 %v2330_v18, %v644_v62  ;;  %v967_v8 = vmul.f32 %v2355_v27, %v644_v62  ;;  %v2534_v11 = vld [vmem:[#allocation2 + $0x51] sm:$0xff]  ;;  %326 = vst.msk [vmem:[#allocation2 + $0xa9] sm:$0xff] %vm225_vm0, %v293_v59  ;;  %v388_v49 = vmul.f32 %v644_v62, %v2304_v3 }
  0x51   : > { %v774_v4 = vmul.f32 %v2332_v19, %v741_v63  ;;  %v838_v6 = vld [vmem:[#allocation2 + $0x4a] sm:$0xff]  ;;  %v1064_v9 = vmul.f32 %v2365_v31, %v741_v63  ;;  %v936_v12 = vld [vmem:[#allocation2 + $0x60] sm:$0xff]  ;;  %v775_v15 = vmul.f32 %v2332_v19, %v2534_v11  ;;  %v2541_v16 = vld [vmem:[#allocation2 + $0x52] sm:$0xff]  ;;  %327 = vst.msk [vmem:[#allocation2 + $0xb1] sm:$0xff] %vm225_vm0, %v294_v39  ;;  %v1065_v47 = vmul.f32 %v2365_v31, %v2534_v11 }
  0x52   : > { %v2532_v10 = vld [vmem:[#allocation2 + $0x50] sm:$0xff]  ;;  %v1033_v13 = vld [vmem:[#allocation2 + $0x61] sm:$0xff]  ;;  %v709_v20 = vadd.f32 %v677_v2, %v612_v60  ;;  %v871_v21 = vmul.f32 %v2341_v22, %v838_v6  ;;  %v999_v24 = vadd.f32 %v967_v8, %v901_v61  ;;  %v1161_v25 = vmul.f32 %v2375_v35, %v838_v6  ;;  %v296_v62 = vld [vmem:[%s2300_s25 + $0x78] sm:$0xff] }
  0x53   : > { %v678_v14 = vmul.f32 %v2330_v18, %v2532_v10  ;;  %v1130_v23 = vld [vmem:[#allocation2 + $0x62] sm:$0xff]  ;;  %v969_v30 = vmul.f32 %v2355_v27, %v936_v12  ;;  %v1066_v33 = vmul.f32 %v2365_v31, %v1033_v13  ;;  %v872_v37 = vmul.f32 %v2341_v22, %v2541_v16  ;;  %v2563_v1 = vld [vmem:[#allocation2 + $0x6a] sm:$0xff]  ;;  %329 = vst.msk [vmem:[#allocation2 + $0xc9] sm:$0xff] %vm225_vm0, %v296_v62 }
  0x54   : > { %v2546_v26 = vld [vmem:[#allocation2 + $0x68] sm:$0xff]  ;;  %v806_v38 = vadd.f32 %v774_v4, %v709_v20  ;;  %v1163_v40 = vmul.f32 %v2375_v35, %v1130_v23  ;;  %v1096_v41 = vadd.f32 %v1064_v9, %v999_v24  ;;  %v968_v32 = vmul.f32 %v2355_v27, %v2532_v10  ;;  %v295_v39 = vld [vmem:[%s2300_s25 + $0x70] sm:$0xff] }
  0x55   : > { %v2548_v28 = vld [vmem:[#allocation2 + $0x69] sm:$0xff]  ;;  %v710_v34 = vadd.f32 %v678_v14, %v613_v0  ;;  %v970_v42 = vmul.f32 %v2355_v27, %v2546_v26  ;;  %v485_v50 = vmul.f32 %v741_v63, %v2309_v5  ;;  %v1162_v53 = vmul.f32 %v2375_v35, %v2541_v16  ;;  %328 = vst.msk [vmem:[#allocation2 + $0xc1] sm:$0xff] %vm225_vm0, %v295_v39 }
  0x56   : > { %v1067_v45 = vmul.f32 %v2365_v31, %v2548_v28  ;;  %v903_v36 = vadd.f32 %v871_v21, %v806_v38  ;;  %v1193_v48 = vadd.f32 %v1161_v25, %v1096_v41  ;;  %v1000_v52 = vadd.f32 %v968_v32, %v902_v17  ;;  %v298_v20 = vld [vmem:[%s2300_s25 + $0x88] sm:$0xff]  ;;  %v2588_v25 = vld [vmem:[#allocation2 + $0x79] sm:$0xff] }
  0x57   : > { %v807_v44 = vadd.f32 %v775_v15, %v710_v34  ;;  %v582_v54 = vmul.f32 %v838_v6, %v2314_v7  ;;  %v517_v57 = vadd.f32 %v485_v50, %v388_v49  ;;  %v679_v58 = vmul.f32 %v936_v12, %v2330_v18  ;;  %v297_v6 = vld [vmem:[%s2300_s25 + $0x80] sm:$0xff]  ;;  %v2582_v15 = vld [vmem:[#allocation2 + $0x78] sm:$0xff]  ;;  %331 = vst.msk [vmem:[#allocation2 + $0xe1] sm:$0xff] %vm225_vm0, %v298_v20  ;;  %v299_v20 = vld [vmem:[%s2300_s25 + $0x90] sm:$0xff] }
  0x58   : > { %v1001_v55 = vadd.f32 %v969_v30, %v903_v36  ;;  %v1229_v56 = vadd.f32 %v2400_v43, %v1193_v48  ;;  %v1164_v60 = vmul.f32 %v2375_v35, %v2563_v1  ;;  %v1097_v61 = vadd.f32 %v1065_v47, %v1000_v52  ;;  %330 = vst.msk [vmem:[#allocation2 + $0xd9] sm:$0xff] %vm225_vm0, %v297_v6  ;;  %v2597_v41 = vld [vmem:[#allocation2 + $0x7a] sm:$0xff]  ;;  %v2609_v47 = vld [vmem:[#allocation2 + $0x90] sm:$0xff] }
  0x59   : > { %v904_v51 = vadd.f32 %v872_v37, %v807_v44  ;;  %v614_v2 = vadd.f32 %v582_v54, %v517_v57  ;;  %v776_v4 = vmul.f32 %v1033_v13, %v2332_v19  ;;  %v873_v14 = vmul.f32 %v1130_v23, %v2341_v22  ;;  %v2611_v36 = vld [vmem:[#allocation2 + $0x91] sm:$0xff]  ;;  %332 = vst.msk [vmem:[#allocation2 + $0xf1] sm:$0xff] %vm225_vm0, %v299_v20 }
  0x5a   : > { %v1098_v63 = vadd.f32 %v1066_v33, %v1001_v55  ;;  %v2576_v0 = vmax.f32 %v1229_v56, 0.0  ;;  %v1194_v9 = vadd.f32 %v1162_v53, %v1097_v61  ;;  %v390_v17 = vmul.f32 %v936_v12, %v2304_v3  ;;  %v2617_v52 = vld [vmem:[#allocation2 + $0x92] sm:$0xff] }
  0x5b   : > { %v1002_v59 = vadd.f32 %v970_v42, %v904_v51  ;;  %v711_v24 = vadd.f32 %v679_v58, %v614_v2  ;;  %v487_v30 = vmul.f32 %v1033_v13, %v2309_v5  ;;  %v584_v33 = vmul.f32 %v1130_v23, %v2314_v7  ;;  %v939_v2 = vld [vmem:[#allocation2 + $0x80] sm:$0xff] }
  0x5c   : > { %v1195_v21 = vadd.f32 %v1163_v40, %v1098_v63  ;;  %1309 = vperm.xlu1 %2216, %v2576_v0   ;;  %v1230_v37 = vadd.f32 %v2400_v43, %v1194_v9  ;;  %v971_v38 = vmul.f32 %v2355_v27, %v2582_v15  ;;  %v681_v44 = vmul.f32 %v2582_v15, %v2330_v18  ;;  %v1036_v9 = vld [vmem:[#allocation2 + $0x81] sm:$0xff] }
  0x5d   : > { %v1099_v8 = vadd.f32 %v1067_v45, %v1002_v59  ;;  %v808_v40 = vadd.f32 %v776_v4, %v711_v24  ;;  %v519_v42 = vadd.f32 %v487_v30, %v390_v17  ;;  %v1068_v23 = vmul.f32 %v2365_v31, %v2588_v25 }
  0x5e   : > { %v1231_v12 = vadd.f32 %v2400_v43, %v1195_v21  ;;  %v1165_v45 = vmul.f32 %v2375_v35, %v2597_v41  ;;  %v778_v32 = vmul.f32 %v2588_v25, %v2332_v19  ;;  %v2615_v49 = vmax.f32 %v1230_v37, 0.0 }
  0x5f   : > { %v1196_v34 = vadd.f32 %v1164_v60, %v1099_v8  ;;  %v905_v50 = vadd.f32 %v873_v14, %v808_v40  ;;  %v616_v51 = vadd.f32 %v584_v33, %v519_v42  ;;  %v875_v53 = vmul.f32 %v2597_v41, %v2341_v22 }
  0x60   : > { %v2613_v48 = vmax.f32 %v1231_v12, 0.0  ;;  %v389_v54 = vmul.f32 %v2532_v10, %v2304_v3  ;;  %v486_v55 = vmul.f32 %v2534_v11, %v2309_v5  ;;  %v583_v56 = vmul.f32 %v2541_v16, %v2314_v7 }
  0x61   : > { %v1232_v13 = vadd.f32 %v2400_v43, %v1196_v34  ;;  %v1003_v57 = vadd.f32 %v971_v38, %v905_v50  ;;  %v713_v58 = vadd.f32 %v681_v44, %v616_v51  ;;  %v973_v59 = vmul.f32 %v2355_v27, %v2609_v47  ;;  %v1133_v34 = vld [vmem:[#allocation2 + $0x82] sm:$0xff]  ;;  %v2659_v44 = vld [vmem:[#allocation2 + $0x98] sm:$0xff] }
  0x62   : > { %3863 = vst [vmem:[#allocation5_spill] sm:$0xff] %v2613_v48  ;;  %1319 = vperm.xlu2 %2217, %v2613_v48   ;;  %v1070_v60 = vmul.f32 %v2365_v31, %v2611_v36  ;;  %v1167_v10 = vmul.f32 %v2375_v35, %v2617_v52  ;;  %v518_v11 = vadd.f32 %v486_v55, %v389_v54 }
  0x63   : > { %v2632_v61 = vmax.f32 %v1232_v13, 0.0  ;;  %v680_v16 = vmul.f32 %v2546_v26, %v2330_v18  ;;  %v1100_v39 = vadd.f32 %v1068_v23, %v1003_v57  ;;  %v810_v62 = vadd.f32 %v778_v32, %v713_v58  ;;  %v2662_v32 = vld [vmem:[#allocation2 + $0x99] sm:$0xff] }
  0x64   : > { %1314 = vperm.xlu1 %2216, %v2615_v49   ;;  %v777_v63 = vmul.f32 %v2548_v28, %v2332_v19  ;;  %v391_v4 = vmul.f32 %v2546_v26, %v2304_v3  ;;  %v615_v6 = vadd.f32 %v583_v56, %v518_v11  ;;  %v874_v8 = vmul.f32 %v2563_v1, %v2341_v22  ;;  %v300_v26 = vld [vmem:[%s2300_s25 + $0x98] sm:$0xff] }
  0x65   : > { %v488_v14 = vmul.f32 %v2548_v28, %v2309_v5  ;;  %v585_v17 = vmul.f32 %v2563_v1, %v2314_v7  ;;  %v1197_v21 = vadd.f32 %v1165_v45, %v1100_v39  ;;  %v907_v24 = vadd.f32 %v875_v53, %v810_v62  ;;  %333 = vst.msk [vmem:[#allocation2 + $0xf9] sm:$0xff] %vm225_vm0, %v300_v26 }
  0x66   : > { %v972_v30 = vmul.f32 %v2355_v27, %v939_v2  ;;  %v1069_v33 = vmul.f32 %v2365_v31, %v1036_v9  ;;  %v712_v37 = vadd.f32 %v680_v16, %v615_v6  ;;  %v1166_v38 = vmul.f32 %v2375_v35, %v1133_v34 }
  0x67   : > { %v520_v12 = vadd.f32 %v488_v14, %v391_v4  ;;  %v682_v28 = vmul.f32 %v939_v2, %v2330_v18  ;;  %v1233_v1 = vadd.f32 %v2400_v43, %v1197_v21  ;;  %v1005_v40 = vadd.f32 %v973_v59, %v907_v24  ;;  %v2672_v59 = vld [vmem:[#allocation2 + $0x9a] sm:$0xff]  ;;  %v2693_v21 = vld [vmem:[#allocation2 + $0xb2] sm:$0xff] }
  0x68   : > { %v779_v42 = vmul.f32 %v1036_v9, %v2332_v19  ;;  %v393_v13 = vmul.f32 %v939_v2, %v2304_v3  ;;  %v809_v23 = vadd.f32 %v777_v63, %v712_v37  ;;  %v490_v50 = vmul.f32 %v1036_v9, %v2309_v5  ;;  %v2683_v2 = vld [vmem:[#allocation2 + $0xb0] sm:$0xff] }
  0x69   : > { %v617_v45 = vadd.f32 %v585_v17, %v520_v12  ;;  %v587_v51 = vmul.f32 %v1133_v34, %v2314_v7  ;;  %v2667_v53 = vmax.f32 %v1233_v1, 0.0  ;;  %v1102_v54 = vadd.f32 %v1070_v60, %v1005_v40  ;;  %v2685_v9 = vld [vmem:[#allocation2 + $0xb1] sm:$0xff] }
  0x6a   : > { %1324 = vperm.xlu2 %2217, %v2632_v61   ;;  %v876_v55 = vmul.f32 %v1133_v34, %v2341_v22  ;;  %v974_v56 = vmul.f32 %v2355_v27, %v2659_v44  ;;  %v906_v57 = vadd.f32 %v874_v8, %v809_v23  ;;  %v522_v11 = vadd.f32 %v490_v50, %v393_v13  ;;  %v942_v13 = vld [vmem:[#allocation2 + $0xa8] sm:$0xff] }
  0x6b   : > { %v714_v58 = vadd.f32 %v682_v28, %v617_v45  ;;  %v684_v16 = vmul.f32 %v2659_v44, %v2330_v18  ;;  %1329 = vperm.xlu0 %2215, %v2667_v53   ;;  %v1199_v39 = vadd.f32 %v1167_v10, %v1102_v54  ;;  %v1071_v60 = vmul.f32 %v2365_v31, %v2662_v32  ;;  %v301_v10 = vld [vmem:[%s2300_s25 + $0xa0] sm:$0xff] }
  0x6c   : > { %v1168_v62 = vmul.f32 %v2375_v35, %v2672_v59  ;;  %v781_v63 = vmul.f32 %v2662_v32, %v2332_v19  ;;  %v1004_v4 = vadd.f32 %v972_v30, %v906_v57  ;;  %v619_v8 = vadd.f32 %v587_v51, %v522_v11  ;;  %334 = vst.msk [vmem:[#allocation2 + $0x109] sm:$0xff] %vm225_vm0, %v301_v10 }
  0x6d   : > { %v811_v6 = vadd.f32 %v779_v42, %v714_v58  ;;  %v392_v14 = vmul.f32 %v2582_v15, %v2304_v3  ;;  %v1235_v17 = vadd.f32 %v2400_v43, %v1199_v39  ;;  %v878_v20 = vmul.f32 %v2672_v59, %v2341_v22  ;;  %v303_v39 = vld [vmem:[%s2300_s25 + $0xb0] sm:$0xff] }
  0x6e   : > { %v489_v24 = vmul.f32 %v2588_v25, %v2309_v5  ;;  %v586_v30 = vmul.f32 %v2597_v41, %v2314_v7  ;;  %v1101_v34 = vadd.f32 %v1069_v33, %v1004_v4  ;;  %v716_v37 = vadd.f32 %v684_v16, %v619_v8  ;;  %v1136_v8 = vld [vmem:[#allocation2 + $0xaa] sm:$0xff]  ;;  %336 = vst.msk [vmem:[#allocation2 + $0x121] sm:$0xff] %vm225_vm0, %v303_v39  ;;  %v2765_v39 = vld [vmem:[#allocation2 + $0xda] sm:$0xff] }
  0x6f   : > { %v908_v26 = vadd.f32 %v876_v55, %v811_v6  ;;  %v976_v15 = vmul.f32 %v2355_v27, %v2683_v2  ;;  %v2702_v12 = vmax.f32 %v1235_v17, 0.0  ;;  %v1073_v28 = vmul.f32 %v2365_v31, %v2685_v9  ;;  %v1039_v6 = vld [vmem:[#allocation2 + $0xa9] sm:$0xff] }
  0x70   : > { %v521_v1 = vadd.f32 %v489_v24, %v392_v14  ;;  %v683_v25 = vmul.f32 %v2609_v47, %v2330_v18  ;;  %v1198_v40 = vadd.f32 %v1166_v38, %v1101_v34  ;;  %v813_v42 = vadd.f32 %v781_v63, %v716_v37  ;;  %v302_v38 = vld [vmem:[%s2300_s25 + $0xa8] sm:$0xff]  ;;  %v2736_v34 = vld [vmem:[#allocation2 + $0xc0] sm:$0xff] }
  0x71   : > { %3864 = vst [vmem:[#allocation6_spill] sm:$0xff] %v2702_v12  ;;  %v1006_v41 = vadd.f32 %v974_v56, %v908_v26  ;;  %v1170_v33 = vmul.f32 %v2375_v35, %v2693_v21  ;;  %v780_v45 = vmul.f32 %v2611_v36, %v2332_v19  ;;  %v394_v50 = vmul.f32 %v2609_v47, %v2304_v3 }
  0x72   : > { %1339 = vperm.xlu2 %2217, %v2702_v12   ;;  %v618_v23 = vadd.f32 %v586_v30, %v521_v1  ;;  %v491_v51 = vmul.f32 %v2611_v36, %v2309_v5  ;;  %v1234_v54 = vadd.f32 %v2400_v43, %v1198_v40  ;;  %v910_v56 = vadd.f32 %v878_v20, %v813_v42  ;;  %v304_v20 = vld [vmem:[%s2300_s25 + $0xb8] sm:$0xff]  ;;  %v2739_v1 = vld [vmem:[#allocation2 + $0xc1] sm:$0xff] }
  0x73   : > { %v1103_v55 = vadd.f32 %v1071_v60, %v1006_v41  ;;  %v588_v57 = vmul.f32 %v2617_v52, %v2314_v7  ;;  %335 = vst.msk [vmem:[#allocation2 + $0x111] sm:$0xff] %vm225_vm0, %v302_v38  ;;  %v877_v11 = vmul.f32 %v2617_v52, %v2341_v22  ;;  %v685_v47 = vmul.f32 %v942_v13, %v2330_v18 }
  0x74   : > { %v715_v58 = vadd.f32 %v683_v25, %v618_v23  ;;  %v523_v16 = vadd.f32 %v491_v51, %v394_v50  ;;  %v2726_v36 = vmax.f32 %v1234_v54, 0.0  ;;  %v1008_v4 = vadd.f32 %v976_v15, %v910_v56  ;;  %337 = vst.msk [vmem:[#allocation2 + $0x129] sm:$0xff] %vm225_vm0, %v304_v20  ;;  %v2749_v50 = vld [vmem:[#allocation2 + $0xc2] sm:$0xff] }
  0x75   : > { %v1200_v63 = vadd.f32 %v1168_v62, %v1103_v55  ;;  %v975_v60 = vmul.f32 %v2355_v27, %v942_v13  ;;  %v1072_v10 = vmul.f32 %v2365_v31, %v1039_v6  ;;  %v782_v52 = vmul.f32 %v1039_v6, %v2332_v19 }
  0x76   : > { %3865 = vst [vmem:[#allocation7_spill] sm:$0xff] %v2726_v36  ;;  %v812_v14 = vadd.f32 %v780_v45, %v715_v58  ;;  %v620_v17 = vadd.f32 %v588_v57, %v523_v16  ;;  %1334 = vperm.xlu1 %2216, %v2726_v36   ;;  %v1105_v30 = vadd.f32 %v1073_v28, %v1008_v4  ;;  %v2761_v57 = vld [vmem:[#allocation2 + $0xd8] sm:$0xff] }
  0x77   : > { %v1236_v24 = vadd.f32 %v2400_v43, %v1200_v63  ;;  %v879_v62 = vmul.f32 %v1136_v8, %v2341_v22  ;;  %v396_v26 = vmul.f32 %v942_v13, %v2304_v3  ;;  %v493_v25 = vmul.f32 %v1039_v6, %v2309_v5 }
  0x78   : > { %v909_v37 = vadd.f32 %v877_v11, %v812_v14  ;;  %v717_v15 = vadd.f32 %v685_v47, %v620_v17  ;;  %v590_v40 = vmul.f32 %v1136_v8, %v2314_v7  ;;  %v1202_v42 = vadd.f32 %v1170_v33, %v1105_v30  ;;  %v2763_v47 = vld [vmem:[#allocation2 + $0xd9] sm:$0xff] }
  0x79   : > { %v2744_v41 = vmax.f32 %v1236_v24, 0.0  ;;  %v1169_v28 = vmul.f32 %v2375_v35, %v1136_v8  ;;  %v977_v23 = vmul.f32 %v2355_v27, %v2736_v34  ;;  %v525_v51 = vadd.f32 %v493_v25, %v396_v26 }
  0x7a   : > { %v1007_v45 = vadd.f32 %v975_v60, %v909_v37  ;;  %v814_v13 = vadd.f32 %v782_v52, %v717_v15  ;;  %v687_v38 = vmul.f32 %v2736_v34, %v2330_v18  ;;  %v1238_v54 = vadd.f32 %v2400_v43, %v1202_v42  ;;  %v945_v37 = vld [vmem:[#allocation2 + $0xc8] sm:$0xff] }
  0x7b   : > { %1344 = vperm.xlu0 %2215, %v2744_v41   ;;  %v1074_v33 = vmul.f32 %v2365_v31, %v2739_v1  ;;  %v1171_v55 = vmul.f32 %v2375_v35, %v2749_v50  ;;  %v784_v56 = vmul.f32 %v2739_v1, %v2332_v19  ;;  %v622_v16 = vadd.f32 %v590_v40, %v525_v51 }
  0x7c   : > { %v1104_v58 = vadd.f32 %v1072_v10, %v1007_v45  ;;  %v911_v11 = vadd.f32 %v879_v62, %v814_v13  ;;  %v395_v63 = vmul.f32 %v2659_v44, %v2304_v3  ;;  %v2769_v4 = vmax.f32 %v1238_v54, 0.0 }
  0x7d   : > { %v881_v60 = vmul.f32 %v2749_v50, %v2341_v22  ;;  %v492_v6 = vmul.f32 %v2662_v32, %v2309_v5  ;;  %v589_v8 = vmul.f32 %v2672_v59, %v2314_v7  ;;  %v719_v17 = vadd.f32 %v687_v38, %v622_v16 }
  0x7e   : > { %3866 = vst [vmem:[#allocation8_spill] sm:$0xff] %v2769_v4  ;;  %v1201_v14 = vadd.f32 %v1169_v28, %v1104_v58  ;;  %v1009_v10 = vadd.f32 %v977_v23, %v911_v11  ;;  %v979_v52 = vmul.f32 %v2355_v27, %v2761_v57  ;;  %1354 = vperm.xlu2 %2217, %v2769_v4   ;;  %v305_v28 = vld [vmem:[%s2300_s25 + $0xc0] sm:$0xff]  ;;  %v306_v58 = vld [vmem:[%s2300_s25 + $0xc8] sm:$0xff] }
  0x7f   : > { %v1076_v44 = vmul.f32 %v2365_v31, %v2763_v47  ;;  %v1173_v20 = vmul.f32 %v2375_v35, %v2765_v39  ;;  %v524_v24 = vadd.f32 %v492_v6, %v395_v63  ;;  %v686_v32 = vmul.f32 %v2683_v2, %v2330_v18  ;;  %338 = vst.msk [vmem:[#allocation2 + $0x139] sm:$0xff] %vm225_vm0, %v305_v28 }
  0x80   : > { %v1237_v59 = vadd.f32 %v2400_v43, %v1201_v14  ;;  %v1106_v30 = vadd.f32 %v1074_v33, %v1009_v10  ;;  %v816_v62 = vadd.f32 %v784_v56, %v719_v17  ;;  %v783_v26 = vmul.f32 %v2685_v9, %v2332_v19  ;;  %v1139_v33 = vld [vmem:[#allocation2 + $0xca] sm:$0xff]  ;;  %339 = vst.msk [vmem:[#allocation2 + $0x141] sm:$0xff] %vm225_vm0, %v306_v58 }
  0x81   : > { %v621_v15 = vadd.f32 %v589_v8, %v524_v24  ;;  %v397_v25 = vmul.f32 %v2683_v2, %v2304_v3  ;;  %v494_v40 = vmul.f32 %v2685_v9, %v2309_v5  ;;  %v591_v42 = vmul.f32 %v2693_v21, %v2314_v7  ;;  %v1042_v2 = vld [vmem:[#allocation2 + $0xc9] sm:$0xff]  ;;  %v2809_v8 = vld [vmem:[#allocation2 + $0xe0] sm:$0xff] }
  0x82   : > { %v2796_v23 = vmax.f32 %v1237_v59, 0.0  ;;  %v1203_v45 = vadd.f32 %v1171_v55, %v1106_v30  ;;  %v913_v13 = vadd.f32 %v881_v60, %v816_v62  ;;  %v880_v51 = vmul.f32 %v2693_v21, %v2341_v22  ;;  %v2815_v24 = vld [vmem:[#allocation2 + $0xe1] sm:$0xff] }
  0x83   : > { %v718_v38 = vadd.f32 %v686_v32, %v621_v15  ;;  %v978_v54 = vmul.f32 %v2355_v27, %v945_v37  ;;  %v526_v56 = vadd.f32 %v494_v40, %v397_v25  ;;  %v688_v9 = vmul.f32 %v945_v37, %v2330_v18  ;;  %v2825_v15 = vld [vmem:[#allocation2 + $0xe2] sm:$0xff] }
  0x84   : > { %3867 = vst [vmem:[#allocation9_spill] sm:$0xff] %v2796_v23  ;;  %1349 = vperm.xlu1 %2216, %v2796_v23   ;;  %v1239_v11 = vadd.f32 %v2400_v43, %v1203_v45  ;;  %v1011_v55 = vadd.f32 %v979_v52, %v913_v13  ;;  %v1075_v16 = vmul.f32 %v2365_v31, %v1042_v2 }
  0x85   : > { %v1172_v21 = vmul.f32 %v2375_v35, %v1139_v33  ;;  %v815_v63 = vadd.f32 %v783_v26, %v718_v38  ;;  %v623_v60 = vadd.f32 %v591_v42, %v526_v56  ;;  %v785_v6 = vmul.f32 %v1042_v2, %v2332_v19  ;;  %v2834_v38 = vld [vmem:[#allocation2 + $0xf8] sm:$0xff]  ;;  %v307_v56 = vld [vmem:[%s2300_s25 + $0xd0] sm:$0xff] }
  0x86   : > { %v399_v14 = vmul.f32 %v945_v37, %v2304_v3  ;;  %v2813_v10 = vmax.f32 %v1239_v11, 0.0  ;;  %v1108_v17 = vadd.f32 %v1076_v44, %v1011_v55  ;;  %v496_v52 = vmul.f32 %v1042_v2, %v2309_v5  ;;  %v2836_v2 = vld [vmem:[#allocation2 + $0xf9] sm:$0xff]  ;;  %340 = vst.msk [vmem:[#allocation2 + $0x151] sm:$0xff] %vm225_vm0, %v307_v56 }
  0x87   : > { %v593_v32 = vmul.f32 %v1139_v33, %v2314_v7  ;;  %v912_v59 = vadd.f32 %v880_v51, %v815_v63  ;;  %v720_v30 = vadd.f32 %v688_v9, %v623_v60  ;;  %v882_v62 = vmul.f32 %v1139_v33, %v2341_v22  ;;  %v2845_v55 = vld [vmem:[#allocation2 + $0xfa] sm:$0xff] }
  0x88   : > { %v980_v26 = vmul.f32 %v2355_v27, %v2809_v8  ;;  %1359 = vperm.xlu0 %2215, %v2813_v10   ;;  %v1205_v37 = vadd.f32 %v1173_v20, %v1108_v17  ;;  %v1077_v44 = vmul.f32 %v2365_v31, %v2815_v24  ;;  %v528_v25 = vadd.f32 %v496_v52, %v399_v14  ;;  %v309_v56 = vld [vmem:[%s2300_s25 + $0xe0] sm:$0xff] }
  0x89   : > { %v690_v40 = vmul.f32 %v2809_v8, %v2330_v18  ;;  %v1010_v42 = vadd.f32 %v978_v54, %v912_v59  ;;  %v817_v28 = vadd.f32 %v785_v6, %v720_v30  ;;  %v1174_v45 = vmul.f32 %v2375_v35, %v2825_v15  ;;  %342 = vst.msk [vmem:[#allocation2 + $0x169] sm:$0xff] %vm225_vm0, %v309_v56 }
  0x8a   : > { %v787_v13 = vmul.f32 %v2815_v24, %v2332_v19  ;;  %v1241_v51 = vadd.f32 %v2400_v43, %v1205_v37  ;;  %v625_v20 = vadd.f32 %v593_v32, %v528_v25  ;;  %v398_v33 = vmul.f32 %v2736_v34, %v2304_v3 }
  0x8b   : > { %v495_v54 = vmul.f32 %v2739_v1, %v2309_v5  ;;  %v1107_v9 = vadd.f32 %v1075_v16, %v1010_v42  ;;  %v914_v58 = vadd.f32 %v882_v62, %v817_v28  ;;  %v884_v11 = vmul.f32 %v2825_v15, %v2341_v22  ;;  %v948_v62 = vld [vmem:[#allocation2 + $0xf0] sm:$0xff] }
  0x8c   : > { %v592_v63 = vmul.f32 %v2749_v50, %v2314_v7  ;;  %v2850_v60 = vmax.f32 %v1241_v51, 0.0  ;;  %v722_v34 = vadd.f32 %v690_v40, %v625_v20  ;;  %v689_v1 = vmul.f32 %v2761_v57, %v2330_v18 }
  0x8d   : > { %v527_v6 = vadd.f32 %v495_v54, %v398_v33  ;;  %v1204_v16 = vadd.f32 %v1172_v21, %v1107_v9  ;;  %v1012_v14 = vadd.f32 %v980_v26, %v914_v58  ;;  %v982_v17 = vmul.f32 %v2355_v27, %v2834_v38  ;;  %v308_v21 = vld [vmem:[%s2300_s25 + $0xd8] sm:$0xff] }
  0x8e   : > { %3868 = vst [vmem:[#allocation10_spill] sm:$0xff] %v2850_v60  ;;  %v1079_v52 = vmul.f32 %v2365_v31, %v2836_v2  ;;  %1369 = vperm.xlu2 %2217, %v2850_v60   ;;  %v819_v50 = vadd.f32 %v787_v13, %v722_v34  ;;  %v1176_v32 = vmul.f32 %v2375_v35, %v2845_v55 }
  0x8f   : > { %v624_v59 = vadd.f32 %v592_v63, %v527_v6  ;;  %v786_v30 = vmul.f32 %v2763_v47, %v2332_v19  ;;  %v1240_v26 = vadd.f32 %v2400_v43, %v1204_v16  ;;  %v1109_v37 = vadd.f32 %v1077_v44, %v1012_v14  ;;  %341 = vst.msk [vmem:[#allocation2 + $0x159] sm:$0xff] %vm225_vm0, %v308_v21  ;;  %v1045_v44 = vld [vmem:[#allocation2 + $0xf1] sm:$0xff]  ;;  %v310_v16 = vld [vmem:[%s2300_s25 + $0xe8] sm:$0xff] }
  0x90   : > { %v400_v25 = vmul.f32 %v2761_v57, %v2304_v3  ;;  %v497_v40 = vmul.f32 %v2763_v47, %v2309_v5  ;;  %v916_v42 = vadd.f32 %v884_v11, %v819_v50  ;;  %v883_v13 = vmul.f32 %v2765_v39, %v2341_v22  ;;  %v1142_v63 = vld [vmem:[#allocation2 + $0xf2] sm:$0xff]  ;;  %343 = vst.msk [vmem:[#allocation2 + $0x171] sm:$0xff] %vm225_vm0, %v310_v16 }
  0x91   : > { %v721_v28 = vadd.f32 %v689_v1, %v624_v59  ;;  %v594_v51 = vmul.f32 %v2765_v39, %v2314_v7  ;;  %v2874_v20 = vmax.f32 %v1240_v26, 0.0  ;;  %v1206_v33 = vadd.f32 %v1174_v45, %v1109_v37  ;;  %v2885_v1 = vld [vmem:[#allocation2 + $0x108] sm:$0xff] }
  0x92   : > { %v529_v54 = vadd.f32 %v497_v40, %v400_v25  ;;  %v691_v57 = vmul.f32 %v948_v62, %v2330_v18  ;;  %v1014_v47 = vadd.f32 %v982_v17, %v916_v42  ;;  %v981_v58 = vmul.f32 %v2355_v27, %v948_v62  ;;  %v2894_v37 = vld [vmem:[#allocation2 + $0x109] sm:$0xff] }
  0x93   : > { %v818_v9 = vadd.f32 %v786_v30, %v721_v28  ;;  %v1078_v11 = vmul.f32 %v2365_v31, %v1045_v44  ;;  %1364 = vperm.xlu1 %2216, %v2874_v20   ;;  %v1242_v39 = vadd.f32 %v2400_v43, %v1206_v33  ;;  %v1175_v45 = vmul.f32 %v2375_v35, %v1142_v63  ;;  %v2904_v33 = vld [vmem:[#allocation2 + $0x10a] sm:$0xff] }
  0x94   : > { %v626_v34 = vadd.f32 %v594_v51, %v529_v54  ;;  %v788_v6 = vmul.f32 %v1045_v44, %v2332_v19  ;;  %v1111_v14 = vadd.f32 %v1079_v52, %v1014_v47  ;;  %v402_v50 = vmul.f32 %v948_v62, %v2304_v3  ;;  %v2909_v47 = vld [vmem:[#allocation2 + $0x120] sm:$0xff] }
  0x95   : > { %v915_v17 = vadd.f32 %v883_v13, %v818_v9  ;;  %v499_v59 = vmul.f32 %v1045_v44, %v2309_v5  ;;  %v2891_v30 = vmax.f32 %v1242_v39, 0.0  ;;  %v885_v26 = vmul.f32 %v1142_v63, %v2341_v22  ;;  %v2911_v9 = vld [vmem:[#allocation2 + $0x121] sm:$0xff] }
  0x96   : > { %v723_v21 = vadd.f32 %v691_v57, %v626_v34  ;;  %v596_v25 = vmul.f32 %v1142_v63, %v2314_v7  ;;  %v1208_v40 = vadd.f32 %v1176_v32, %v1111_v14  ;;  %v693_v52 = vmul.f32 %v2885_v1, %v2330_v18 }
  0x97   : > { %v1013_v42 = vadd.f32 %v981_v58, %v915_v17  ;;  %v531_v28 = vadd.f32 %v499_v59, %v402_v50  ;;  %1374 = vperm.xlu0 %2215, %v2891_v30   ;;  %v983_v13 = vmul.f32 %v2355_v27, %v2885_v1  ;;  %v1080_v51 = vmul.f32 %v2365_v31, %v2894_v37 }
  0x98   : > { %v820_v62 = vadd.f32 %v788_v6, %v723_v21  ;;  %v1244_v44 = vadd.f32 %v2400_v43, %v1208_v40  ;;  %v790_v57 = vmul.f32 %v2894_v37, %v2332_v19  ;;  %v401_v58 = vmul.f32 %v2809_v8, %v2304_v3  ;;  %v2938_v21 = vld [vmem:[#allocation2 + $0x122] sm:$0xff] }
  0x99   : > { %v1110_v54 = vadd.f32 %v1078_v11, %v1013_v42  ;;  %v628_v32 = vadd.f32 %v596_v25, %v531_v28  ;;  %v498_v63 = vmul.f32 %v2815_v24, %v2309_v5  ;;  %v595_v39 = vmul.f32 %v2825_v15, %v2314_v7  ;;  %v2931_v24 = vld [vmem:[%s3829_s2] ss:$0 sm:$0xff]  ;;  %v951_v42 = vld [vmem:[#allocation2 + $0x110] sm:$0xff] }
  0x9a   : > { %v917_v56 = vadd.f32 %v885_v26, %v820_v62  ;;  %v2919_v43 = vmax.f32 %v1244_v44, 0.0  ;;  %v887_v6 = vmul.f32 %v2904_v33, %v2341_v22  ;;  %v1177_v14 = vmul.f32 %v2375_v35, %v2904_v33 }
  0x9b   : > { %v1207_v11 = vadd.f32 %v1175_v45, %v1110_v54  ;;  %v725_v34 = vadd.f32 %v693_v52, %v628_v32  ;;  %v530_v17 = vadd.f32 %v498_v63, %v401_v58  ;;  %v692_v8 = vmul.f32 %v2834_v38, %v2330_v18  ;;  %v311_v52 = vld [vmem:[%s2300_s25 + $0xf0] sm:$0xff]  ;;  %v312_v58 = vld [vmem:[%s2300_s25 + $0xf8] sm:$0xff] }
  0x9c   : > { %v1015_v16 = vadd.f32 %v983_v13, %v917_v56  ;;  %1384 = vperm.xlu2 %2217, %v2919_v43   ;;  %v985_v50 = vmul.f32 %v2355_v27, %v2909_v47  ;;  %v1082_v59 = vmul.f32 %v2365_v31, %v2911_v9  ;;  %v789_v40 = vmul.f32 %v2836_v2, %v2332_v19  ;;  %v1048_v56 = vld [vmem:[#allocation2 + $0x111] sm:$0xff] }
  0x9d   : > { %v1243_v15 = vadd.f32 %v2931_v24, %v1207_v11  ;;  %v822_v45 = vadd.f32 %v790_v57, %v725_v34  ;;  %v627_v25 = vadd.f32 %v595_v39, %v530_v17  ;;  %v403_v28 = vmul.f32 %v2834_v38, %v2304_v3  ;;  %344 = vst.msk [vmem:[#allocation2 + $0x181] sm:$0xff] %vm225_vm0, %v311_v52  ;;  %v1145_v39 = vld [vmem:[#allocation2 + $0x112] sm:$0xff] }
  0x9e   : > { %v1112_v26 = vadd.f32 %v1080_v51, %v1015_v16  ;;  %v500_v44 = vmul.f32 %v2836_v2, %v2309_v5  ;;  %v597_v54 = vmul.f32 %v2845_v55, %v2314_v7  ;;  %v1179_v32 = vmul.f32 %v2375_v35, %v2938_v21  ;;  %345 = vst.msk [vmem:[#allocation2 + $0x189] sm:$0xff] %vm225_vm0, %v312_v58 }
  0x9f   : > { %v2945_v62 = vmax.f32 %v1243_v15, 0.0  ;;  %v919_v13 = vadd.f32 %v887_v6, %v822_v45  ;;  %v724_v57 = vadd.f32 %v692_v8, %v627_v25  ;;  %v886_v38 = vmul.f32 %v2845_v55, %v2341_v22  ;;  %v2963_v8 = vld [vmem:[#allocation2 + $0x128] sm:$0xff] }
  0xa0   : > { %v1209_v51 = vadd.f32 %v1177_v14, %v1112_v26  ;;  %v984_v2 = vmul.f32 %v2355_v27, %v951_v42  ;;  %v532_v11 = vadd.f32 %v500_v44, %v403_v28  ;;  %v694_v34 = vmul.f32 %v951_v42, %v2330_v18 }
  0xa1   : > { %1379 = vperm.xlu1 %2216, %v2945_v62   ;;  %v1017_v63 = vadd.f32 %v985_v50, %v919_v13  ;;  %v821_v16 = vadd.f32 %v789_v40, %v724_v57  ;;  %v1081_v14 = vmul.f32 %v2365_v31, %v1048_v56  ;;  %v791_v17 = vmul.f32 %v1048_v56, %v2332_v19  ;;  %v2971_v40 = vld [vmem:[#allocation2 + $0x129] sm:$0xff] }
  0xa2   : > { %v1245_v6 = vadd.f32 %v2931_v24, %v1209_v51  ;;  %v629_v15 = vadd.f32 %v597_v54, %v532_v11  ;;  %v405_v45 = vmul.f32 %v951_v42, %v2304_v3  ;;  %v502_v50 = vmul.f32 %v1048_v56, %v2309_v5  ;;  %v2982_v56 = vld [vmem:[#allocation2 + $0x12a] sm:$0xff] }
  0xa3   : > { %v1114_v55 = vadd.f32 %v1082_v59, %v1017_v63  ;;  %v918_v25 = vadd.f32 %v886_v38, %v821_v16  ;;  %v888_v28 = vmul.f32 %v1145_v39, %v2341_v22  ;;  %v599_v52 = vmul.f32 %v1145_v39, %v2314_v7 }
  0xa4   : > { %v2968_v26 = vmax.f32 %v1245_v6, 0.0  ;;  %v726_v44 = vadd.f32 %v694_v34, %v629_v15  ;;  %v534_v51 = vadd.f32 %v502_v50, %v405_v45  ;;  %v696_v59 = vmul.f32 %v2963_v8, %v2330_v18  ;;  %v2987_v6 = vld [vmem:[#allocation2 + $0x140] sm:$0xff] }
  0xa5   : > { %v1211_v13 = vadd.f32 %v1179_v32, %v1114_v55  ;;  %v1016_v42 = vadd.f32 %v984_v2, %v918_v25  ;;  %v1178_v54 = vmul.f32 %v2375_v35, %v1145_v39  ;;  %v986_v57 = vmul.f32 %v2355_v27, %v2963_v8  ;;  %v2989_v2 = vld [vmem:[#allocation2 + $0x141] sm:$0xff] }
  0xa6   : > { %1389 = vperm.xlu0 %2215, %v2968_v26   ;;  %v1083_v38 = vmul.f32 %v2365_v31, %v2971_v40  ;;  %v823_v58 = vadd.f32 %v791_v17, %v726_v44  ;;  %v631_v63 = vadd.f32 %v599_v52, %v534_v51  ;;  %v793_v11 = vmul.f32 %v2971_v40, %v2332_v19  ;;  %v3010_v44 = vld [vmem:[#allocation2 + $0x142] sm:$0xff] }
  0xa7   : > { %v1247_v32 = vadd.f32 %v2931_v24, %v1211_v13  ;;  %v1113_v34 = vadd.f32 %v1081_v14, %v1016_v42  ;;  %v404_v39 = vmul.f32 %v2885_v1, %v2304_v3  ;;  %v501_v16 = vmul.f32 %v2894_v37, %v2309_v5 }
  0xa8   : > { %v598_v55 = vmul.f32 %v2904_v33, %v2314_v7  ;;  %v920_v17 = vadd.f32 %v888_v28, %v823_v58  ;;  %v728_v45 = vadd.f32 %v696_v59, %v631_v63  ;;  %v890_v14 = vmul.f32 %v2982_v56, %v2341_v22 }
  0xa9   : > { %v2997_v15 = vmax.f32 %v1247_v32, 0.0  ;;  %v1210_v50 = vadd.f32 %v1178_v54, %v1113_v34  ;;  %v1180_v25 = vmul.f32 %v2375_v35, %v2982_v56  ;;  %v533_v52 = vadd.f32 %v501_v16, %v404_v39  ;;  %v954_v54 = vld [vmem:[#allocation2 + $0x138] sm:$0xff] }
  0xaa   : > { %v695_v1 = vmul.f32 %v2909_v47, %v2330_v18  ;;  %v1018_v37 = vadd.f32 %v986_v57, %v920_v17  ;;  %v825_v13 = vadd.f32 %v793_v11, %v728_v45  ;;  %v988_v33 = vmul.f32 %v2355_v27, %v2987_v6 }
  0xab   : > { %1399 = vperm.xlu2 %2217, %v2997_v15   ;;  %v1085_v28 = vmul.f32 %v2365_v31, %v2989_v2  ;;  %v1246_v51 = vadd.f32 %v2931_v24, %v1210_v50  ;;  %v630_v59 = vadd.f32 %v598_v55, %v533_v52  ;;  %v792_v42 = vmul.f32 %v2911_v9, %v2332_v19 }
  0xac   : > { %v406_v32 = vmul.f32 %v2909_v47, %v2304_v3  ;;  %v1115_v57 = vadd.f32 %v1083_v38, %v1018_v37  ;;  %v922_v58 = vadd.f32 %v890_v14, %v825_v13  ;;  %v503_v63 = vmul.f32 %v2911_v9, %v2309_v5  ;;  %v1051_v47 = vld [vmem:[#allocation2 + $0x139] sm:$0xff] }
  0xad   : > { %v600_v11 = vmul.f32 %v2938_v21, %v2314_v7  ;;  %v3021_v34 = vmax.f32 %v1246_v51, 0.0  ;;  %v1182_v39 = vmul.f32 %v2375_v35, %v3010_v44  ;;  %v727_v16 = vadd.f32 %v695_v1, %v630_v59  ;;  %v1148_v38 = vld [vmem:[#allocation2 + $0x13a] sm:$0xff] }
  0xae   : > { %v889_v55 = vmul.f32 %v2938_v21, %v2341_v22  ;;  %v1212_v17 = vadd.f32 %v1180_v25, %v1115_v57  ;;  %v1020_v45 = vadd.f32 %v988_v33, %v922_v58  ;;  %v535_v14 = vadd.f32 %v503_v63, %v406_v32  ;;  %v3033_v25 = vld [vmem:[#allocation2 + $0x150] sm:$0xff] }
  0xaf   : > { %3869 = vst [vmem:[#allocation11_spill] sm:$0xff] %v3021_v34  ;;  %v697_v50 = vmul.f32 %v954_v54, %v2330_v18  ;;  %1394 = vperm.xlu1 %2216, %v3021_v34   ;;  %v824_v9 = vadd.f32 %v792_v42, %v727_v16  ;;  %v987_v52 = vmul.f32 %v2355_v27, %v954_v54  ;;  %v3037_v57 = vld [vmem:[#allocation2 + $0x151] sm:$0xff] }
  0xb0   : > { %v1084_v37 = vmul.f32 %v2365_v31, %v1051_v47  ;;  %v794_v13 = vmul.f32 %v1051_v47, %v2332_v19  ;;  %v1248_v1 = vadd.f32 %v2931_v24, %v1212_v17  ;;  %v1117_v51 = vadd.f32 %v1085_v28, %v1020_v45 }
  0xb1   : > { %v632_v21 = vadd.f32 %v600_v11, %v535_v14  ;;  %v408_v33 = vmul.f32 %v954_v54, %v2304_v3  ;;  %v921_v59 = vadd.f32 %v889_v55, %v824_v9  ;;  %v1181_v32 = vmul.f32 %v2375_v35, %v1148_v38  ;;  %v3046_v54 = vld [vmem:[#allocation2 + $0x152] sm:$0xff] }
  0xb2   : > { %v505_v42 = vmul.f32 %v1051_v47, %v2309_v5  ;;  %v602_v58 = vmul.f32 %v1148_v38, %v2314_v7  ;;  %v3041_v63 = vmax.f32 %v1248_v1, 0.0  ;;  %v1214_v16 = vadd.f32 %v1182_v39, %v1117_v51  ;;  %v3058_v1 = vld [vmem:[#allocation2 + $0x169] sm:$0xff] }
  0xb3   : > { %v729_v34 = vadd.f32 %v697_v50, %v632_v21  ;;  %v891_v28 = vmul.f32 %v1148_v38, %v2341_v22  ;;  %v1019_v11 = vadd.f32 %v987_v52, %v921_v59  ;;  %v989_v17 = vmul.f32 %v2355_v27, %v3033_v25  ;;  %v3056_v52 = vld [vmem:[#allocation2 + $0x168] sm:$0xff] }
  0xb4   : > { %3870 = vst [vmem:[#allocation12_spill] sm:$0xff] %v3041_v63  ;;  %v537_v55 = vadd.f32 %v505_v42, %v408_v33  ;;  %v699_v45 = vmul.f32 %v3033_v25, %v2330_v18  ;;  %1404 = vperm.xlu0 %2215, %v3041_v63   ;;  %v1250_v47 = vadd.f32 %v2931_v24, %v1214_v16 }
  0xb5   : > { %v826_v14 = vadd.f32 %v794_v13, %v729_v34  ;;  %v1086_v39 = vmul.f32 %v2365_v31, %v3037_v57  ;;  %v796_v38 = vmul.f32 %v3037_v57, %v2332_v19  ;;  %v1116_v50 = vadd.f32 %v1084_v37, %v1019_v11 }
  0xb6   : > { %v634_v9 = vadd.f32 %v602_v58, %v537_v55  ;;  %v407_v51 = vmul.f32 %v2963_v8, %v2304_v3  ;;  %v504_v21 = vmul.f32 %v2971_v40, %v2309_v5  ;;  %v3064_v33 = vmax.f32 %v1250_v47, 0.0  ;;  %v3080_v55 = vld [vmem:[#allocation2 + $0x16a] sm:$0xff] }
  0xb7   : > { %v923_v34 = vadd.f32 %v891_v28, %v826_v14  ;;  %v893_v13 = vmul.f32 %v3046_v54, %v2341_v22  ;;  %v601_v37 = vmul.f32 %v2982_v56, %v2314_v7  ;;  %v1213_v59 = vadd.f32 %v1181_v32, %v1116_v50  ;;  %v957_v14 = vld [vmem:[#allocation2 + $0x158] sm:$0xff] }
  0xb8   : > { %3871 = vst [vmem:[#allocation13_spill] sm:$0xff] %v3064_v33  ;;  %v731_v42 = vadd.f32 %v699_v45, %v634_v9  ;;  %v536_v58 = vadd.f32 %v504_v21, %v407_v51  ;;  %v698_v16 = vmul.f32 %v2987_v6, %v2330_v18  ;;  %1414 = vperm.xlu2 %2217, %v3064_v33  }
  0xb9   : > { %v1021_v8 = vadd.f32 %v989_v17, %v923_v34  ;;  %v1183_v40 = vmul.f32 %v2375_v35, %v3046_v54  ;;  %v991_v28 = vmul.f32 %v2355_v27, %v3056_v52  ;;  %v1088_v11 = vmul.f32 %v2365_v31, %v3058_v1 }
  0xba   : > { %v1249_v56 = vadd.f32 %v2931_v24, %v1213_v59  ;;  %v828_v32 = vadd.f32 %v796_v38, %v731_v42  ;;  %v633_v45 = vadd.f32 %v601_v37, %v536_v58  ;;  %v795_v47 = vmul.f32 %v2989_v2, %v2332_v19  ;;  %v1054_v42 = vld [vmem:[#allocation2 + $0x159] sm:$0xff] }
  0xbb   : > { %v1118_v17 = vadd.f32 %v1086_v39, %v1021_v8  ;;  %v409_v50 = vmul.f32 %v2987_v6, %v2304_v3  ;;  %v506_v9 = vmul.f32 %v2989_v2, %v2309_v5  ;;  %v603_v51 = vmul.f32 %v3010_v44, %v2314_v7  ;;  %v1151_v58 = vld [vmem:[#allocation2 + $0x15a] sm:$0xff] }
  0xbc   : > { %v3090_v21 = vmax.f32 %v1249_v56, 0.0  ;;  %v925_v38 = vadd.f32 %v893_v13, %v828_v32  ;;  %v730_v34 = vadd.f32 %v698_v16, %v633_v45  ;;  %v892_v37 = vmul.f32 %v3010_v44, %v2341_v22  ;;  %v3102_v32 = vld [vmem:[#allocation2 + $0x170] sm:$0xff] }
  0xbd   : > { %v1215_v59 = vadd.f32 %v1183_v40, %v1118_v17  ;;  %v1185_v39 = vmul.f32 %v2375_v35, %v3080_v55  ;;  %v538_v6 = vadd.f32 %v506_v9, %v409_v50  ;;  %v700_v8 = vmul.f32 %v957_v14, %v2330_v18  ;;  %v3105_v9 = vld [vmem:[#allocation2 + $0x171] sm:$0xff] }
  0xbe   : > { %3872 = vst [vmem:[#allocation14_spill] sm:$0xff] %v3090_v21  ;;  %1409 = vperm.xlu1 %2216, %v3090_v21   ;;  %v1023_v2 = vadd.f32 %v991_v28, %v925_v38  ;;  %v827_v33 = vadd.f32 %v795_v47, %v730_v34  ;;  %v990_v56 = vmul.f32 %v2355_v27, %v957_v14 }
  0xbf   : > { %v1087_v13 = vmul.f32 %v2365_v31, %v1054_v42  ;;  %v1251_v16 = vadd.f32 %v2931_v24, %v1215_v59  ;;  %v635_v44 = vadd.f32 %v603_v51, %v538_v6  ;;  %v797_v40 = vmul.f32 %v1054_v42, %v2332_v19 }
  0xc0   : > { %v411_v45 = vmul.f32 %v957_v14, %v2304_v3  ;;  %v1120_v17 = vadd.f32 %v1088_v11, %v1023_v2  ;;  %v924_v50 = vadd.f32 %v892_v37, %v827_v33  ;;  %v508_v28 = vmul.f32 %v1054_v42, %v2309_v5  ;;  %v1153_v42 = vld [vmem:[#allocation2 + $0x172] sm:$0xff] }
  0xc1   : > { %v605_v47 = vmul.f32 %v1151_v58, %v2314_v7  ;;  %v3109_v38 = vmax.f32 %v1251_v16, 0.0  ;;  %v1184_v34 = vmul.f32 %v2375_v35, %v1151_v58  ;;  %v732_v59 = vadd.f32 %v700_v8, %v635_v44 }
  0xc2   : > { %v894_v51 = vmul.f32 %v1151_v58, %v2341_v22  ;;  %v1217_v6 = vadd.f32 %v1185_v39, %v1120_v17  ;;  %v1022_v21 = vadd.f32 %v990_v56, %v924_v50  ;;  %v540_v63 = vadd.f32 %v508_v28, %v411_v45  ;;  %v961_v56 = vld [vmem:[#allocation2 + $0x188] sm:$0xff] }
  0xc3   : > { %3873 = vst [vmem:[#allocation15_spill] sm:$0xff] %v3109_v38  ;;  %v702_v11 = vmul.f32 %v3102_v32, %v2330_v18  ;;  %1419 = vperm.xlu0 %2215, %v3109_v38   ;;  %v829_v33 = vadd.f32 %v797_v40, %v732_v59  ;;  %v992_v14 = vmul.f32 %v2355_v27, %v3102_v32  ;;  %v1058_v45 = vld [vmem:[#allocation2 + $0x189] sm:$0xff] }
  0xc4   : > { %v1089_v37 = vmul.f32 %v2365_v31, %v3105_v9  ;;  %v799_v8 = vmul.f32 %v3105_v9, %v2332_v19  ;;  %v1253_v39 = vadd.f32 %v2931_v24, %v1217_v6  ;;  %v1119_v58 = vadd.f32 %v1087_v13, %v1022_v21 }
  0xc5   : > { %v637_v2 = vadd.f32 %v605_v47, %v540_v63  ;;  %v410_v16 = vmul.f32 %v3033_v25, %v2304_v3  ;;  %v926_v44 = vadd.f32 %v894_v51, %v829_v33  ;;  %v1186_v40 = vmul.f32 %v2375_v35, %v1153_v42 }
  0xc6   : > { %v507_v17 = vmul.f32 %v3037_v57, %v2309_v5  ;;  %v604_v50 = vmul.f32 %v3046_v54, %v2314_v7  ;;  %v3130_v28 = vmax.f32 %v1253_v39, 0.0  ;;  %v1216_v59 = vadd.f32 %v1184_v34, %v1119_v58  ;;  %v1155_v39 = vld [vmem:[#allocation2 + $0x18a] sm:$0xff] }
  0xc7   : > { %v734_v6 = vadd.f32 %v702_v11, %v637_v2  ;;  %v896_v63 = vmul.f32 %v1153_v42, %v2341_v22  ;;  %v1024_v21 = vadd.f32 %v992_v14, %v926_v44  ;;  %v994_v13 = vmul.f32 %v2355_v27, %v961_v56  ;;  %v960_v11 = vld [vmem:[#allocation2 + $0x180] sm:$0xff] }
  0xc8   : > { %3874 = vst [vmem:[#allocation16_spill] sm:$0xff] %v3130_v28  ;;  %v539_v25 = vadd.f32 %v507_v17, %v410_v16  ;;  %v701_v47 = vmul.f32 %v3056_v52, %v2330_v18  ;;  %1429 = vperm.xlu2 %2217, %v3130_v28   ;;  %v1252_v57 = vadd.f32 %v2931_v24, %v1216_v59  ;;  %v1057_v17 = vld [vmem:[#allocation2 + $0x181] sm:$0xff] }
  0xc9   : > { %v831_v51 = vadd.f32 %v799_v8, %v734_v6  ;;  %v1091_v54 = vmul.f32 %v2365_v31, %v1058_v45  ;;  %v798_v34 = vmul.f32 %v3058_v1, %v2332_v19  ;;  %v1121_v33 = vadd.f32 %v1089_v37, %v1024_v21  ;;  %v1154_v21 = vld [vmem:[#allocation2 + $0x182] sm:$0xff] }
  0xca   : > { %v636_v14 = vadd.f32 %v604_v50, %v539_v25  ;;  %v412_v58 = vmul.f32 %v3056_v52, %v2304_v3  ;;  %v509_v2 = vmul.f32 %v3058_v1, %v2309_v5  ;;  %v3145_v16 = vmax.f32 %v1252_v57, 0.0 }
  0xcb   : > { %v928_v44 = vadd.f32 %v896_v63, %v831_v51  ;;  %v895_v8 = vmul.f32 %v3080_v55, %v2341_v22  ;;  %v606_v59 = vmul.f32 %v3080_v55, %v2314_v7  ;;  %v1218_v6 = vadd.f32 %v1186_v40, %v1121_v33  ;;  %v962_v33 = vld [vmem:[#allocation2 + $0x198] sm:$0xff] }
  0xcc   : > { %3875 = vst [vmem:[#allocation17_spill] sm:$0xff] %v3145_v16  ;;  %v733_v37 = vadd.f32 %v701_v47, %v636_v14  ;;  %v541_v50 = vadd.f32 %v509_v2, %v412_v58  ;;  %v703_v25 = vmul.f32 %v960_v11, %v2330_v18  ;;  %1424 = vperm.xlu1 %2216, %v3145_v16  }
  0xcd   : > { %v1026_v52 = vadd.f32 %v994_v13, %v928_v44  ;;  %v1188_v1 = vmul.f32 %v2375_v35, %v1155_v39  ;;  %v993_v63 = vmul.f32 %v2355_v27, %v960_v11  ;;  %v1090_v57 = vmul.f32 %v2365_v31, %v1057_v17 }
  0xce   : > { %v1254_v51 = vadd.f32 %v2931_v24, %v1218_v6  ;;  %v830_v28 = vadd.f32 %v798_v34, %v733_v37  ;;  %v638_v38 = vadd.f32 %v606_v59, %v541_v50  ;;  %v800_v55 = vmul.f32 %v1057_v17, %v2332_v19  ;;  %v1059_v59 = vld [vmem:[#allocation2 + $0x199] sm:$0xff] }
  0xcf   : > { %v1123_v40 = vadd.f32 %v1091_v54, %v1026_v52  ;;  %v897_v47 = vmul.f32 %v1154_v21, %v2341_v22  ;;  %v413_v14 = vmul.f32 %v3102_v32, %v2304_v3  ;;  %v510_v13 = vmul.f32 %v3105_v9, %v2309_v5  ;;  %v1156_v9 = vld [vmem:[#allocation2 + $0x19a] sm:$0xff] }
  0xd0   : > { %v3163_v58 = vmax.f32 %v1254_v51, 0.0  ;;  %v927_v11 = vadd.f32 %v895_v8, %v830_v28  ;;  %v735_v2 = vadd.f32 %v703_v25, %v638_v38  ;;  %v607_v44 = vmul.f32 %v1153_v42, %v2314_v7  ;;  %v963_v50 = vld [vmem:[#allocation2 + $0x1a0] sm:$0xff] }
  0xd1   : > { %v1220_v34 = vadd.f32 %v1188_v1, %v1123_v40  ;;  %v542_v6 = vadd.f32 %v510_v13, %v413_v14  ;;  %v704_v54 = vmul.f32 %v961_v56, %v2330_v18  ;;  %v1187_v37 = vmul.f32 %v2375_v35, %v1154_v21  ;;  %v1157_v40 = vld [vmem:[#allocation2 + $0x1a2] sm:$0xff] }
  0xd2   : > { %1434 = vperm.xlu0 %2215, %v3163_v58   ;;  %v1025_v17 = vadd.f32 %v993_v63, %v927_v11  ;;  %v832_v3 = vadd.f32 %v800_v55, %v735_v2  ;;  %v995_v32 = vmul.f32 %v2355_v27, %v962_v33  ;;  %v801_v38 = vmul.f32 %v1058_v45, %v2332_v19  ;;  %v1060_v63 = vld [vmem:[#allocation2 + $0x1a1] sm:$0xff]  ;;  %v3179_v45 = vpop.permute.xlu2 %1319 }
  0xd3   : > { %v1256_v5 = vadd.f32 %v2931_v24, %v1220_v34  ;;  %v639_v28 = vadd.f32 %v607_v44, %v542_v6  ;;  %v1092_v8 = vmul.f32 %v2365_v31, %v1059_v59  ;;  %v898_v25 = vmul.f32 %v1155_v39, %v2341_v22 }
  0xd4   : > { %v1122_v7 = vadd.f32 %v1090_v57, %v1025_v17  ;;  %v929_v42 = vadd.f32 %v897_v47, %v832_v3  ;;  %v1189_v1 = vmul.f32 %v2375_v35, %v1156_v9  ;;  %v996_v19 = vmul.f32 %v2355_v27, %v963_v50  ;;  %v3878_v50 = vld [vmem:[#allocation12_spill] sm:$0xff] }
  0xd5   : > { %v3173_v18 = vmax.f32 %v1256_v5, 0.0  ;;  %v736_v56 = vadd.f32 %v704_v54, %v639_v28  ;;  %v1093_v33 = vmul.f32 %v2365_v31, %v1060_v63  ;;  %v1190_v13 = vmul.f32 %v2375_v35, %v1157_v40  ;;  %v1300_v54 = vpop.permute.xlu0 %1299  ;;  %v3881_v63 = vld [vmem:[#allocation15_spill] sm:$0xff] }
  0xd6   : > { %v1219_v21 = vadd.f32 %v1187_v37, %v1122_v7  ;;  %v1027_v52 = vadd.f32 %v995_v32, %v929_v42  ;;  %v2240_v44 = vmov 1  }
  0xd7   : > { %3876 = vst [vmem:[#allocation18_spill] sm:$0xff] %v3173_v18  ;;  %1444 = vperm.xlu2 %2217, %v3173_v18   ;;  %v833_v51 = vadd.f32 %v801_v38, %v736_v56 }
  0xd8   : > { %v1255_v57 = vadd.f32 %v2931_v24, %v1219_v21  ;;  %v1124_v55 = vadd.f32 %v1092_v8, %v1027_v52  ;;  %v3879_v21 = vld [vmem:[#allocation11_spill] sm:$0xff]  ;;  %v3880_v52 = vld [vmem:[#allocation13_spill] sm:$0xff] }
  0xd9   : > { %v930_v47 = vadd.f32 %v898_v25, %v833_v51  ;;  %v3882_v51 = vld [vmem:[#allocation14_spill] sm:$0xff] }
  0xda   : > { %v3183_v22 = vmax.f32 %v1255_v57, 0.0  ;;  %v1221_v39 = vadd.f32 %v1189_v1, %v1124_v55  ;;  %v3193_v59 = vpop.permute.xlu2 %1324  ;;  %v3883_v55 = vld [vmem:[#allocation16_spill] sm:$0xff] }
  0xdb   : > { %v1028_v14 = vadd.f32 %v996_v19, %v930_v47 }
  0xdc   : > { %3877 = vst [vmem:[#allocation19_spill] sm:$0xff] %v3183_v22  ;;  %1439 = vperm.xlu1 %2216, %v3183_v22   ;;  %v1257_v11 = vadd.f32 %v2931_v24, %v1221_v39  ;;  %v3270_v39 = vld [vmem:[%s3830_s3] sm:$0xf] }
  0xdd   : > { %v1125_v27 = vadd.f32 %v1093_v33, %v1028_v14  ;;  %v3211_v37 = vpop.permute.xlu0 %1304  ;;  %3885 = vst [vmem:[#allocation11_spill] sm:$0xff] %v3270_v39 }
  0xde   : > { %v3188_v2 = vmax.f32 %v1257_v11, 0.0 }
  0xdf   : > { %2218 = vset.pattern.permute.xlu2 %v2240_v44  ;;  %v1222_v34 = vadd.f32 %v1190_v13, %v1125_v27  ;;  %v3275_v13 = vperm.slane %v3270_v39, 0  ;;  %v3280_v27 = vperm.slane %v3270_v39, 1 }
  0xe0   : > { %1449 = vperm.xlu0 %2215, %v3188_v2   ;;  %1523 = vperm.xlu2 %2218, %v2415_v46  }
  0xe1   : > { %v1258_v31 = vadd.f32 %v2931_v24, %v1222_v34  ;;  %v3205_v24 = vpop.permute.xlu1 %1309  ;;  %v1458_v11 = vmul.f32 %v3275_v13, %v1300_v54  ;;  %v3285_v34 = vld [vmem:[%s3831_s4] ss:$0 sm:$0xff] }
  0xe2   : > { %v3200_v35 = vpop.permute.xlu2 %1339 }
  0xe3   : > { %v3195_v6 = vmax.f32 %v1258_v31, 0.0  ;;  %v1490_v54 = vadd.f32 %v3285_v34, %v1458_v11 }
  0xe5   : > { %1454 = vperm.xlu1 %2216, %v3195_v6   ;;  %v3219_v5 = vpop.permute.xlu0 %1329 }
  0xe8   : > { %2219 = vset.pattern.permute.xlu0 %v2240_v44  ;;  %1535 = vperm.xlu2 %2218, %v2615_v49  }
  0xe9   : > { %1527 = vperm.xlu0 %2219, %v2488_v29   ;;  %v1315_v3 = vpop.permute.xlu1 %1314 }
  0xea   : > { %v3207_v17 = vpop.permute.xlu2 %1354 }
  0xed   : > { %2220 = vset.pattern.permute.xlu1 %v2240_v44  ;;  %v3228_v38 = vpop.permute.xlu0 %1344  ;;  %v2241_v44 = vmov 2  }
  0xee   : > { %1531 = vperm.xlu1 %2220, %v2576_v0  }
  0xf0   : > { %1543 = vperm.xlu2 %2218, %v2632_v61  }
  0xf1   : > { %1547 = vperm.xlu0 %2219, %v2667_v53   ;;  %v3223_v9 = vpop.permute.xlu1 %1334 }
  0xf2   : > { %v3215_v32 = vpop.permute.xlu2 %1369 }
  0xf6   : > { %1539 = vperm.xlu1 %2220, %v2613_v48  }
  0xf8   : > { %1555 = vperm.xlu2 %2218, %v2702_v12  }
  0xf9   : > { %1559 = vperm.xlu0 %2219, %v2744_v41   ;;  %v3233_v7 = vpop.permute.xlu1 %1349 }
  0xfa   : > { %v3226_v28 = vpop.permute.xlu2 %1384  ;;  %v3238_v8 = vpop.permute.xlu0 %1359 }
  0xfe   : > { %1551 = vperm.xlu1 %2220, %v2726_v36  }
 0x100   : > { %1567 = vperm.xlu2 %2218, %v2769_v4  }
 0x101   : > { %1571 = vperm.xlu0 %2219, %v2813_v10  }
 0x105   : > { %v3235_v42 = vpop.permute.xlu2 %1399  ;;  %v3242_v56 = vpop.permute.xlu1 %1364 }
 0x106   : > { %1563 = vperm.xlu1 %2220, %v2796_v23  }
 0x108   : > { %1579 = vperm.xlu2 %2218, %v2850_v60  }
 0x109   : > { %1583 = vperm.xlu0 %2219, %v2891_v30   ;;  %v3248_v1 = vpop.permute.xlu0 %1374 }
 0x10e   : > { %1575 = vperm.xlu1 %2220, %v2874_v20  }
 0x110   : > { %1591 = vperm.xlu2 %2218, %v2919_v43  }
 0x111   : > { %1595 = vperm.xlu0 %2219, %v2968_v26  }
 0x112   : > { %v3244_v25 = vpop.permute.xlu2 %1414 }
 0x113   : > { %v3252_v19 = vpop.permute.xlu1 %1379 }
 0x116   : > { %1587 = vperm.xlu1 %2220, %v2945_v62  }
 0x118   : > { %1603 = vperm.xlu2 %2218, %v2997_v15   ;;  %v3258_v40 = vpop.permute.xlu0 %1389 }
 0x119   : > { %1607 = vperm.xlu0 %2219, %v3878_v50  }
 0x11e   : > { %1599 = vperm.xlu1 %2220, %v3879_v21  }
 0x120   : > { %1615 = vperm.xlu2 %2218, %v3880_v52  }
 0x121   : > { %1619 = vperm.xlu0 %2219, %v3881_v63   ;;  %v3262_v47 = vpop.permute.xlu1 %1394 }
 0x122   : > { %v3254_v57 = vpop.permute.xlu2 %1429  ;;  %3884 = vst [vmem:[#allocation12_spill] sm:$0xff] %v3262_v47 }
 0x126   : > { %1611 = vperm.xlu1 %2220, %v3882_v51   ;;  %v3272_v14 = vpop.permute.xlu0 %1404 }
 0x127   : > { %3886 = vst [vmem:[#allocation13_spill] sm:$0xff] %v3272_v14  ;;  %v1461_v14 = vmul.f32 %v3275_v13, %v1315_v3 }
 0x128   : > { %1627 = vperm.xlu2 %2218, %v3883_v55  }
 0x129   : > { %1631 = vperm.xlu0 %2219, %v3163_v58  }
 0x12e   : > { %1623 = vperm.xlu1 %2220, %v3145_v16  }
 0x130   : > { %1639 = vperm.xlu2 %2218, %v3173_v18   ;;  %v3289_v31 = vpop.permute.xlu1 %1409 }
 0x131   : > { %1643 = vperm.xlu0 %2219, %v3188_v2   ;;  %v3265_v33 = vpop.permute.xlu2 %1444  ;;  %3887 = vst [vmem:[#allocation15_spill] sm:$0xff] %v3289_v31  ;;  %v1493_v31 = vadd.f32 %v3285_v34, %v1461_v14 }
 0x135   : > { %v3296_v18 = vpop.permute.xlu0 %1419 }
 0x136   : > { %1635 = vperm.xlu1 %2220, %v3183_v22  }
 0x138   : > { %2221 = vset.pattern.permute.xlu2 %v2241_v44 }
 0x139   : > { %2222 = vset.pattern.permute.xlu0 %v2241_v44  ;;  %1716 = vperm.xlu2 %2221, %v2415_v46  }
 0x13a   : > { %1720 = vperm.xlu0 %2222, %v2488_v29   ;;  %v1524_v22 = vpop.permute.xlu2 %1523 }
 0x13b   : > { %v1651_v39 = vmul.f32 %v3280_v27, %v1524_v22 }
 0x13d   : > { %v3293_v47 = vadd.f32 %v1651_v39, %v1490_v54  ;;  %v1463_v39 = vmul.f32 %v3275_v13, %v3193_v59  ;;  %v1466_v59 = vmul.f32 %v3275_v13, %v3200_v35 }
 0x13e   : > { %1647 = vperm.xlu1 %2220, %v3195_v6   ;;  %v3303_v11 = vpop.permute.xlu1 %1424 }
 0x13f   : > { %3888 = vst [vmem:[#allocation14_spill] sm:$0xff] %v3303_v11  ;;  %v1495_v14 = vadd.f32 %v3285_v34, %v1463_v39  ;;  %v1498_v39 = vadd.f32 %v3285_v34, %v1466_v59 }
 0x141   : > { %1728 = vperm.xlu2 %2221, %v2615_v49  }
 0x142   : > { %1740 = vperm.xlu0 %2222, %v2667_v53   ;;  %v1536_v46 = vpop.permute.xlu2 %1535 }
 0x143   : > { %v1654_v29 = vmul.f32 %v3280_v27, %v1536_v46 }
 0x144   : > { %v3310_v3 = vpop.permute.xlu0 %1434 }
 0x145   : > { %v3305_v22 = vadd.f32 %v1654_v29, %v1493_v31 }
 0x146   : > { %2223 = vset.pattern.permute.xlu1 %v2241_v44 }
 0x147   : > { %1724 = vperm.xlu1 %2223, %v2576_v0  }
 0x149   : > { %1736 = vperm.xlu2 %2221, %v2632_v61  }
 0x14a   : > { %1752 = vperm.xlu0 %2222, %v2744_v41   ;;  %v1544_v54 = vpop.permute.xlu2 %1543 }
 0x14b   : > { %v1656_v46 = vmul.f32 %v3280_v27, %v1544_v54 }
 0x14d   : > { %v3316_v11 = vadd.f32 %v1656_v46, %v1495_v14  ;;  %v1469_v46 = vmul.f32 %v3275_v13, %v3207_v17 }
 0x14e   : > { %v3318_v29 = vpop.permute.xlu1 %1439 }
 0x14f   : > { %1732 = vperm.xlu1 %2223, %v2613_v48   ;;  %v1501_v59 = vadd.f32 %v3285_v34, %v1469_v46  ;;  %v1464_v46 = vmul.f32 %v3275_v13, %v3219_v5 }
 0x151   : > { %1748 = vperm.xlu2 %2221, %v2702_v12   ;;  %v1459_v12 = vmul.f32 %v3275_v13, %v3211_v37 }
 0x152   : > { %1764 = vperm.xlu0 %2222, %v2813_v10   ;;  %v3325_v44 = vpop.permute.xlu0 %1449  ;;  %v1556_v31 = vpop.permute.xlu2 %1555 }
 0x153   : > { %v1659_v54 = vmul.f32 %v3280_v27, %v1556_v31 }
 0x155   : > { %v3329_v14 = vadd.f32 %v1659_v54, %v1498_v39  ;;  %v1491_v54 = vadd.f32 %v3285_v34, %v1459_v12 }
 0x157   : > { %3889 = vst [vmem:[#allocation20_spill] sm:$0xff] %v3329_v14  ;;  %1744 = vperm.xlu1 %2223, %v2726_v36   ;;  %v3334_v35 = vpop.permute.xlu1 %1454  ;;  %v1460_v36 = vmul.f32 %v3275_v13, %v3205_v24 }
 0x159   : > { %1760 = vperm.xlu2 %2221, %v2769_v4   ;;  %v1472_v4 = vmul.f32 %v3275_v13, %v3215_v32  ;;  %v1492_v12 = vadd.f32 %v3285_v34, %v1460_v36  ;;  %v1462_v36 = vmul.f32 %v3275_v13, %v3179_v45 }
 0x15a   : > { %1776 = vperm.xlu0 %2222, %v2891_v30   ;;  %v1568_v48 = vpop.permute.xlu2 %1567 }
 0x15b   : > { %v1528_v31 = vpop.permute.xlu0 %1527  ;;  %v1662_v39 = vmul.f32 %v3280_v27, %v1568_v48 }
 0x15c   : > { %v1652_v17 = vmul.f32 %v3280_v27, %v1528_v31 }
 0x15d   : > { %v3346_v14 = vadd.f32 %v1662_v39, %v1501_v59  ;;  %v1504_v59 = vadd.f32 %v3285_v34, %v1472_v4  ;;  %v1467_v4 = vmul.f32 %v3275_v13, %v3228_v38 }
 0x15e   : > { %v3348_v37 = vadd.f32 %v1652_v17, %v1491_v54  ;;  %v1496_v17 = vadd.f32 %v3285_v34, %v1464_v46  ;;  %v1494_v46 = vadd.f32 %v3285_v34, %v1462_v36 }
 0x15f   : > { %1756 = vperm.xlu1 %2223, %v2796_v23   ;;  %v1475_v23 = vmul.f32 %v3275_v13, %v3226_v28 }
 0x160   : > { %v1532_v48 = vpop.permute.xlu1 %1531 }
 0x161   : > { %v1653_v31 = vmul.f32 %v3280_v27, %v1532_v48  ;;  %1772 = vperm.xlu2 %2221, %v2850_v60  }
 0x162   : > { %1788 = vperm.xlu0 %2222, %v2968_v26   ;;  %v1580_v24 = vpop.permute.xlu2 %1579 }
 0x163   : > { %v3360_v39 = vadd.f32 %v1653_v31, %v1492_v12  ;;  %v1548_v32 = vpop.permute.xlu0 %1547  ;;  %v1665_v54 = vmul.f32 %v3280_v27, %v1580_v24  ;;  %v1507_v24 = vadd.f32 %v3285_v34, %v1475_v23  ;;  %v1470_v23 = vmul.f32 %v3275_v13, %v3238_v8 }
 0x164   : > { %v1657_v5 = vmul.f32 %v3280_v27, %v1548_v32 }
 0x165   : > { %v3367_v48 = vadd.f32 %v1665_v54, %v1504_v59  ;;  %v1499_v54 = vadd.f32 %v3285_v34, %v1467_v4 }
 0x166   : > { %v3369_v60 = vadd.f32 %v1657_v5, %v1496_v17  ;;  %v1465_v17 = vmul.f32 %v3275_v13, %v3223_v9 }
 0x167   : > { %1768 = vperm.xlu1 %2223, %v2874_v20  }
 0x168   : > { %v1540_v12 = vpop.permute.xlu1 %1539  ;;  %v1497_v4 = vadd.f32 %v3285_v34, %v1465_v17 }
 0x169   : > { %v1655_v31 = vmul.f32 %v3280_v27, %v1540_v12  ;;  %1784 = vperm.xlu2 %2221, %v2919_v43   ;;  %v1478_v12 = vmul.f32 %v3275_v13, %v3235_v42 }
 0x16a   : > { %1800 = vperm.xlu0 %2222, %v3878_v50   ;;  %v1592_v45 = vpop.permute.xlu2 %1591 }
 0x16b   : > { %v3381_v59 = vadd.f32 %v1655_v31, %v1494_v46  ;;  %v1560_v28 = vpop.permute.xlu0 %1559  ;;  %v1668_v32 = vmul.f32 %v3280_v27, %v1592_v45  ;;  %v1510_v45 = vadd.f32 %v3285_v34, %v1478_v12  ;;  %v1473_v12 = vmul.f32 %v3275_v13, %v3248_v1 }
 0x16c   : > { %v1660_v38 = vmul.f32 %v3280_v27, %v1560_v28 }
 0x16d   : > { %v3388_v5 = vadd.f32 %v1668_v32, %v1507_v24  ;;  %v1502_v32 = vadd.f32 %v3285_v34, %v1470_v23 }
 0x16e   : > { %v3390_v36 = vadd.f32 %v1660_v38, %v1499_v54  ;;  %v1468_v54 = vmul.f32 %v3275_v13, %v3233_v7 }
 0x16f   : > { %1780 = vperm.xlu1 %2223, %v2945_v62  }
 0x170   : > { %v1552_v46 = vpop.permute.xlu1 %1551  ;;  %v1500_v23 = vadd.f32 %v3285_v34, %v1468_v54 }
 0x171   : > { %v1658_v31 = vmul.f32 %v3280_v27, %v1552_v46  ;;  %1796 = vperm.xlu2 %2221, %v2997_v15   ;;  %v1481_v46 = vmul.f32 %v3275_v13, %v3244_v25 }
 0x172   : > { %1812 = vperm.xlu0 %2222, %v3881_v63   ;;  %v1604_v9 = vpop.permute.xlu2 %1603 }
 0x173   : > { %v3402_v24 = vadd.f32 %v1658_v31, %v1497_v4  ;;  %v1572_v42 = vpop.permute.xlu0 %1571  ;;  %v1671_v28 = vmul.f32 %v3280_v27, %v1604_v9  ;;  %v1513_v9 = vadd.f32 %v3285_v34, %v1481_v46  ;;  %v1476_v46 = vmul.f32 %v3275_v13, %v3258_v40 }
 0x174   : > { %v1663_v8 = vmul.f32 %v3280_v27, %v1572_v42 }
 0x175   : > { %v3409_v38 = vadd.f32 %v1671_v28, %v1510_v45  ;;  %v1505_v28 = vadd.f32 %v3285_v34, %v1473_v12 }
 0x176   : > { %v3411_v17 = vadd.f32 %v1663_v8, %v1502_v32  ;;  %v1471_v32 = vmul.f32 %v3275_v13, %v3242_v56 }
 0x177   : > { %1792 = vperm.xlu1 %2223, %v3879_v21  }
 0x178   : > { %v1564_v4 = vpop.permute.xlu1 %1563  ;;  %v1503_v12 = vadd.f32 %v3285_v34, %v1471_v32 }
 0x179   : > { %v1661_v31 = vmul.f32 %v3280_v27, %v1564_v4  ;;  %1808 = vperm.xlu2 %2221, %v3880_v52   ;;  %v1484_v4 = vmul.f32 %v3275_v13, %v3254_v57 }
 0x17a   : > { %1824 = vperm.xlu0 %2222, %v3163_v58   ;;  %v1616_v7 = vpop.permute.xlu2 %1615 }
 0x17b   : > { %v3423_v45 = vadd.f32 %v1661_v31, %v1500_v23  ;;  %v1584_v25 = vpop.permute.xlu0 %1583  ;;  %v1674_v42 = vmul.f32 %v3280_v27, %v1616_v7  ;;  %v1516_v7 = vadd.f32 %v3285_v34, %v1484_v4  ;;  %v3892_v4 = vld [vmem:[#allocation13_spill] sm:$0xff] }
 0x17c   : > { %v1666_v1 = vmul.f32 %v3280_v27, %v1584_v25 }
 0x17d   : > { %v3430_v8 = vadd.f32 %v1674_v42, %v1513_v9  ;;  %v1508_v42 = vadd.f32 %v3285_v34, %v1476_v46 }
 0x17e   : > { %v3432_v54 = vadd.f32 %v1666_v1, %v1505_v28  ;;  %v1474_v28 = vmul.f32 %v3275_v13, %v3252_v19  ;;  %v2242_v19 = vmov 3  }
 0x17f   : > { %1804 = vperm.xlu1 %2223, %v3882_v51  }
 0x180   : > { %v1576_v23 = vpop.permute.xlu1 %1575  ;;  %v1506_v46 = vadd.f32 %v3285_v34, %v1474_v28 }
 0x181   : > { %v1664_v31 = vmul.f32 %v3280_v27, %v1576_v23  ;;  %1820 = vperm.xlu2 %2221, %v3883_v55   ;;  %v1487_v23 = vmul.f32 %v3275_v13, %v3265_v33  ;;  %v3894_v33 = vld [vmem:[#allocation4_spill] sm:$0xff]  ;;  %v3896_v55 = vld [vmem:[#allocation19_spill] sm:$0xff] }
 0x182   : > { %1836 = vperm.xlu0 %2222, %v3188_v2   ;;  %v1628_v56 = vpop.permute.xlu2 %1627 }
 0x183   : > { %v3444_v9 = vadd.f32 %v1664_v31, %v1503_v12  ;;  %v1596_v57 = vpop.permute.xlu0 %1595  ;;  %v1677_v25 = vmul.f32 %v3280_v27, %v1628_v56  ;;  %v1479_v12 = vmul.f32 %v3275_v13, %v3892_v4 }
 0x184   : > { %v1669_v40 = vmul.f32 %v3280_v27, %v1596_v57  ;;  %v3893_v57 = vld [vmem:[#allocation18_spill] sm:$0xff] }
 0x185   : > { %3890 = vst [vmem:[#allocation21_spill] sm:$0xff] %v3444_v9  ;;  %v3451_v1 = vadd.f32 %v1677_v25, %v1516_v7  ;;  %v1519_v25 = vadd.f32 %v3285_v34, %v1487_v23  ;;  %v1511_v4 = vadd.f32 %v3285_v34, %v1479_v12  ;;  %v1482_v23 = vmul.f32 %v3275_v13, %v3296_v18 }
 0x186   : > { %v3453_v32 = vadd.f32 %v1669_v40, %v1508_v42 }
 0x187   : > { %3891 = vst [vmem:[#allocation22_spill] sm:$0xff] %v3451_v1  ;;  %1816 = vperm.xlu1 %2223, %v3145_v16   ;;  %v3895_v1 = vld [vmem:[#allocation12_spill] sm:$0xff] }
 0x188   : > { %v1588_v31 = vpop.permute.xlu1 %1587 }
 0x189   : > { %v1667_v56 = vmul.f32 %v3280_v27, %v1588_v31  ;;  %1832 = vperm.xlu2 %2221, %v3893_v57   ;;  %v1477_v31 = vmul.f32 %v3275_v13, %v3895_v1 }
 0x18a   : > { %2225 = vset.pattern.permute.xlu0 %v2242_v19  ;;  %v1640_v7 = vpop.permute.xlu2 %1639 }
 0x18b   : > { %v3464_v42 = vadd.f32 %v1667_v56, %v1506_v46  ;;  %1913 = vperm.xlu0 %2225, %v3894_v33   ;;  %v1608_v40 = vpop.permute.xlu0 %1607  ;;  %v1680_v16 = vmul.f32 %v3280_v27, %v1640_v7  ;;  %v3897_v56 = vld [vmem:[#allocation11_spill] sm:$0xff]  ;;  %v1509_v12 = vadd.f32 %v3285_v34, %v1477_v31 }
 0x18c   : > { %v1672_v28 = vmul.f32 %v3280_v27, %v1608_v40  ;;  %v3480_v33 = vperm.slane %v3897_v56, 2  ;;  %v3898_v40 = vld [vmem:[#allocation3_spill] sm:$0xff] }
 0x18d   : > { %v3472_v57 = vadd.f32 %v1680_v16, %v1519_v25  ;;  %v3899_v56 = vld [vmem:[#allocation15_spill] sm:$0xff] }
 0x18e   : > { %v3474_v9 = vadd.f32 %v1672_v28, %v1511_v4  ;;  %v1514_v4 = vadd.f32 %v3285_v34, %v1482_v23  ;;  %v1480_v31 = vmul.f32 %v3275_v13, %v3899_v56 }
 0x18f   : > { %1828 = vperm.xlu1 %2223, %v3896_v55  }
 0x190   : > { %v1600_v46 = vpop.permute.xlu1 %1599  ;;  %v1512_v23 = vadd.f32 %v3285_v34, %v1480_v31 }
 0x191   : > { %v1670_v7 = vmul.f32 %v3280_v27, %v1600_v46  ;;  %2224 = vset.pattern.permute.xlu2 %v2242_v19 }
 0x192   : > { %1909 = vperm.xlu2 %2224, %v3898_v40  }
 0x193   : > { %v3485_v16 = vadd.f32 %v1670_v7, %v1509_v12  ;;  %1933 = vperm.xlu0 %2225, %v2667_v53   ;;  %v1620_v1 = vpop.permute.xlu0 %1619  ;;  %v1717_v25 = vpop.permute.xlu2 %1716  ;;  %v1485_v53 = vmul.f32 %v3275_v13, %v3310_v3  ;;  %v3900_v3 = vld [vmem:[#allocation14_spill] sm:$0xff] }
 0x194   : > { %v1675_v18 = vmul.f32 %v3280_v27, %v1620_v1  ;;  %v1844_v28 = vmul.f32 %v3480_v33, %v1717_v25 }
 0x196   : > { %v3493_v55 = vadd.f32 %v1675_v18, %v1514_v4  ;;  %v3496_v46 = vadd.f32 %v1844_v28, %v3293_v47  ;;  %v1517_v47 = vadd.f32 %v3285_v34, %v1485_v53  ;;  %v1483_v18 = vmul.f32 %v3275_v13, %v3900_v3  ;;  %v3902_v3 = vld [vmem:[#allocation6_spill] sm:$0xff] }
 0x197   : > { %1840 = vperm.xlu1 %2223, %v3195_v6  }
 0x198   : > { %v1612_v12 = vpop.permute.xlu1 %1611  ;;  %v1515_v53 = vadd.f32 %v3285_v34, %v1483_v18 }
 0x199   : > { %v1673_v7 = vmul.f32 %v3280_v27, %v1612_v12 }
 0x19a   : > { %1921 = vperm.xlu2 %2224, %v2615_v49   ;;  %v1488_v49 = vmul.f32 %v3275_v13, %v3325_v44 }
 0x19b   : > { %v3504_v40 = vadd.f32 %v1673_v7, %v1512_v23  ;;  %1945 = vperm.xlu0 %2225, %v2744_v41   ;;  %v1632_v56 = vpop.permute.xlu0 %1631  ;;  %v1729_v1 = vpop.permute.xlu2 %1728 }
 0x19c   : > { %v1678_v25 = vmul.f32 %v3280_v27, %v1632_v56  ;;  %v1847_v4 = vmul.f32 %v3480_v33, %v1729_v1 }
 0x19e   : > { %v3512_v28 = vadd.f32 %v1678_v25, %v1517_v47  ;;  %v3515_v31 = vadd.f32 %v1847_v4, %v3305_v22 }
 0x19f   : > { %2226 = vset.pattern.permute.xlu1 %v2242_v19  ;;  %v1520_v19 = vadd.f32 %v3285_v34, %v1488_v49 }
 0x1a0   : > { %1917 = vperm.xlu1 %2226, %v2576_v0   ;;  %v1624_v41 = vpop.permute.xlu1 %1623  ;;  %v1486_v0 = vmul.f32 %v3275_v13, %v3318_v29 }
 0x1a1   : > { %v1676_v12 = vmul.f32 %v3280_v27, %v1624_v41 }
 0x1a2   : > { %1929 = vperm.xlu2 %2224, %v2632_v61   ;;  %v3901_v61 = vld [vmem:[#allocation5_spill] sm:$0xff] }
 0x1a3   : > { %v3523_v23 = vadd.f32 %v1676_v12, %v1515_v53  ;;  %1957 = vperm.xlu0 %2225, %v2813_v10   ;;  %v1644_v7 = vpop.permute.xlu0 %1643  ;;  %v1737_v22 = vpop.permute.xlu2 %1736  ;;  %v1518_v10 = vadd.f32 %v3285_v34, %v1486_v0  ;;  %v3903_v12 = vld [vmem:[#allocation20_spill] sm:$0xff] }
 0x1a4   : > { %v1681_v56 = vmul.f32 %v3280_v27, %v1644_v7  ;;  %v1849_v44 = vmul.f32 %v3480_v33, %v1737_v22  ;;  %v3905_v0 = vld [vmem:[#allocation8_spill] sm:$0xff] }
 0x1a6   : > { %v3531_v1 = vadd.f32 %v1681_v56, %v1520_v19  ;;  %v3534_v47 = vadd.f32 %v1849_v44, %v3316_v11  ;;  %v1489_v11 = vmul.f32 %v3275_v13, %v3334_v35  ;;  %v3904_v19 = vld [vmem:[#allocation7_spill] sm:$0xff] }
 0x1a8   : > { %1925 = vperm.xlu1 %2226, %v3901_v61   ;;  %v1636_v25 = vpop.permute.xlu1 %1635 }
 0x1a9   : > { %v1679_v4 = vmul.f32 %v3280_v27, %v1636_v25 }
 0x1aa   : > { %1941 = vperm.xlu2 %2224, %v3902_v3  }
 0x1ab   : > { %v3540_v18 = vadd.f32 %v1679_v4, %v1518_v10  ;;  %1969 = vperm.xlu0 %2225, %v2891_v30   ;;  %v1749_v49 = vpop.permute.xlu2 %1748  ;;  %v1521_v30 = vadd.f32 %v3285_v34, %v1489_v11  ;;  %v3906_v34 = vld [vmem:[#allocation9_spill] sm:$0xff] }
 0x1ac   : > { %v1721_v29 = vpop.permute.xlu0 %1720  ;;  %v1852_v41 = vmul.f32 %v3480_v33, %v1749_v49  ;;  %v3907_v49 = vld [vmem:[#allocation10_spill] sm:$0xff] }
 0x1ad   : > { %v1845_v53 = vmul.f32 %v3480_v33, %v1721_v29 }
 0x1ae   : > { %v3548_v7 = vadd.f32 %v1852_v41, %v3903_v12 }
 0x1af   : > { %v3551_v22 = vadd.f32 %v1845_v53, %v3348_v37 }
 0x1b0   : > { %1937 = vperm.xlu1 %2226, %v3904_v19   ;;  %v1648_v56 = vpop.permute.xlu1 %1647 }
 0x1b1   : > { %v1682_v44 = vmul.f32 %v3280_v27, %v1648_v56 }
 0x1b2   : > { %1953 = vperm.xlu2 %2224, %v3905_v0  }
 0x1b3   : > { %v3557_v61 = vadd.f32 %v1682_v44, %v1521_v30  ;;  %1981 = vperm.xlu0 %2225, %v2968_v26   ;;  %v1761_v13 = vpop.permute.xlu2 %1760 }
 0x1b4   : > { %v1741_v35 = vpop.permute.xlu0 %1740  ;;  %v1855_v25 = vmul.f32 %v3480_v33, %v1761_v13 }
 0x1b5   : > { %v1850_v37 = vmul.f32 %v3480_v33, %v1741_v35 }
 0x1b6   : > { %v3563_v10 = vadd.f32 %v1855_v25, %v3346_v14 }
 0x1b7   : > { %v3566_v4 = vadd.f32 %v1850_v37, %v3369_v60 }
 0x1b8   : > { %1949 = vperm.xlu1 %2226, %v3906_v34   ;;  %v3908_v34 = vld [vmem:[#allocation16_spill] sm:$0xff] }
 0x1b9   : > { %v1725_v27 = vpop.permute.xlu1 %1724 }
 0x1ba   : > { %v1846_v3 = vmul.f32 %v3480_v33, %v1725_v27  ;;  %1965 = vperm.xlu2 %2224, %v3907_v49   ;;  %v3909_v27 = vld [vmem:[#allocation21_spill] sm:$0xff] }
 0x1bb   : > { %1993 = vperm.xlu0 %2225, %v3878_v50   ;;  %v1773_v26 = vpop.permute.xlu2 %1772 }
 0x1bc   : > { %v3573_v29 = vadd.f32 %v1846_v3, %v3360_v39  ;;  %v1753_v41 = vpop.permute.xlu0 %1752  ;;  %v1858_v14 = vmul.f32 %v3480_v33, %v1773_v26 }
 0x1bd   : > { %v1853_v11 = vmul.f32 %v3480_v33, %v1753_v41  ;;  %v3910_v41 = vld [vmem:[#allocation22_spill] sm:$0xff] }
 0x1be   : > { %v3578_v60 = vadd.f32 %v1858_v14, %v3367_v48 }
 0x1bf   : > { %v3581_v53 = vadd.f32 %v1853_v11, %v3390_v36 }
 0x1c0   : > { %1961 = vperm.xlu1 %2226, %v2874_v20  }
 0x1c1   : > { %v1733_v12 = vpop.permute.xlu1 %1732 }
 0x1c2   : > { %v1848_v50 = vmul.f32 %v3480_v33, %v1733_v12  ;;  %1977 = vperm.xlu2 %2224, %v2919_v43  }
 0x1c3   : > { %2005 = vperm.xlu0 %2225, %v3881_v63   ;;  %v1785_v39 = vpop.permute.xlu2 %1784 }
 0x1c4   : > { %v3588_v19 = vadd.f32 %v1848_v50, %v3381_v59  ;;  %v1765_v56 = vpop.permute.xlu0 %1764  ;;  %v1861_v48 = vmul.f32 %v3480_v33, %v1785_v39  ;;  %v3912_v50 = vld [vmem:[#allocation18_spill] sm:$0xff] }
 0x1c5   : > { %v1856_v30 = vmul.f32 %v3480_v33, %v1765_v56 }
 0x1c6   : > { %v3593_v36 = vadd.f32 %v1861_v48, %v3388_v5 }
 0x1c7   : > { %v3596_v20 = vadd.f32 %v1856_v30, %v3411_v17 }
 0x1c8   : > { %1973 = vperm.xlu1 %2226, %v2945_v62  }
 0x1c9   : > { %v1745_v43 = vpop.permute.xlu1 %1744 }
 0x1ca   : > { %v1851_v63 = vmul.f32 %v3480_v33, %v1745_v43  ;;  %1989 = vperm.xlu2 %2224, %v2997_v15  }
 0x1cb   : > { %2017 = vperm.xlu0 %2225, %v3163_v58   ;;  %v1797_v59 = vpop.permute.xlu2 %1796 }
 0x1cc   : > { %v3603_v44 = vadd.f32 %v1851_v63, %v3402_v24  ;;  %v1777_v0 = vpop.permute.xlu0 %1776  ;;  %v1864_v5 = vmul.f32 %v3480_v33, %v1797_v59  ;;  %v3913_v59 = vld [vmem:[#allocation19_spill] sm:$0xff] }
 0x1cd   : > { %v1859_v13 = vmul.f32 %v3480_v33, %v1777_v0 }
 0x1ce   : > { %v3608_v17 = vadd.f32 %v1864_v5, %v3409_v38  ;;  %v3914_v5 = vld [vmem:[#allocation11_spill] sm:$0xff] }
 0x1cf   : > { %v3611_v62 = vadd.f32 %v1859_v13, %v3432_v54  ;;  %v3658_v13 = vperm.slane %v3914_v5, 3 }
 0x1d0   : > { %1985 = vperm.xlu1 %2226, %v3879_v21  }
 0x1d1   : > { %v1757_v15 = vpop.permute.xlu1 %1756 }
 0x1d2   : > { %v1854_v58 = vmul.f32 %v3480_v33, %v1757_v15  ;;  %2001 = vperm.xlu2 %2224, %v3880_v52  }
 0x1d3   : > { %2029 = vperm.xlu0 %2225, %v3188_v2   ;;  %v1809_v24 = vpop.permute.xlu2 %1808 }
 0x1d4   : > { %v3618_v35 = vadd.f32 %v1854_v58, %v3423_v45  ;;  %v1789_v25 = vpop.permute.xlu0 %1788  ;;  %v1867_v38 = vmul.f32 %v3480_v33, %v1809_v24 }
 0x1d5   : > { %v1862_v37 = vmul.f32 %v3480_v33, %v1789_v25 }
 0x1d6   : > { %v3623_v54 = vadd.f32 %v1867_v38, %v3430_v8 }
 0x1d7   : > { %v3626_v21 = vadd.f32 %v1862_v37, %v3453_v32 }
 0x1d8   : > { %1997 = vperm.xlu1 %2226, %v3882_v51   ;;  %v3911_v51 = vld [vmem:[#allocation17_spill] sm:$0xff] }
 0x1d9   : > { %v1769_v52 = vpop.permute.xlu1 %1768 }
 0x1da   : > { %v1857_v2 = vmul.f32 %v3480_v33, %v1769_v52  ;;  %2013 = vperm.xlu2 %2224, %v3908_v34  }
 0x1db   : > { %v1821_v45 = vpop.permute.xlu2 %1820 }
 0x1dc   : > { %v3632_v3 = vadd.f32 %v1857_v2, %v3909_v27  ;;  %v1801_v49 = vpop.permute.xlu0 %1800  ;;  %v1870_v26 = vmul.f32 %v3480_v33, %v1821_v45 }
 0x1dd   : > { %v1865_v8 = vmul.f32 %v3480_v33, %v1801_v49 }
 0x1de   : > { %v3637_v14 = vadd.f32 %v1870_v26, %v3910_v41 }
 0x1df   : > { %v3640_v32 = vadd.f32 %v1865_v8, %v3474_v9 }
 0x1e0   : > { %2009 = vperm.xlu1 %2226, %v3911_v51  }
 0x1e1   : > { %v1781_v11 = vpop.permute.xlu1 %1780 }
 0x1e2   : > { %v1860_v12 = vmul.f32 %v3480_v33, %v1781_v11  ;;  %2025 = vperm.xlu2 %2224, %v3912_v50  }
 0x1e3   : > { %v1833_v39 = vpop.permute.xlu2 %1832 }
 0x1e4   : > { %v3646_v56 = vadd.f32 %v1860_v12, %v3464_v42  ;;  %v1813_v48 = vpop.permute.xlu0 %1812  ;;  %v1873_v30 = vmul.f32 %v3480_v33, %v1833_v39 }
 0x1e5   : > { %v1868_v43 = vmul.f32 %v3480_v33, %v1813_v48 }
 0x1e6   : > { %v3651_v9 = vadd.f32 %v1873_v30, %v3472_v57 }
 0x1e7   : > { %v3654_v63 = vadd.f32 %v1868_v43, %v3493_v55 }
 0x1e8   : > { %2021 = vperm.xlu1 %2226, %v3913_v59  }
 0x1e9   : > { %v1793_v0 = vpop.permute.xlu1 %1792 }
 0x1ea   : > { %v1863_v42 = vmul.f32 %v3480_v33, %v1793_v0 }
 0x1ec   : > { %v3662_v15 = vadd.f32 %v1863_v42, %v3485_v16  ;;  %v1825_v58 = vpop.permute.xlu0 %1824  ;;  %v1910_v24 = vpop.permute.xlu2 %1909 }
 0x1ed   : > { %v1871_v25 = vmul.f32 %v3480_v33, %v1825_v58  ;;  %v2037_v57 = vmul.f32 %v3658_v13, %v1910_v24 }
 0x1ef   : > { %v3674_v55 = vadd.f32 %v1871_v25, %v3512_v28  ;;  %v2069_v16 = vadd.f32 %v2037_v57, %v3496_v46 }
 0x1f0   : > { %2033 = vperm.xlu1 %2226, %v3195_v6  }
 0x1f1   : > { %v1805_v38 = vpop.permute.xlu1 %1804  ;;  %2102 = vst.msk [vmem:[%s3671_s15] sm:$0xff] %vm2101_vm2, %v2069_v16 }
 0x1f2   : > { %v1866_v37 = vmul.f32 %v3480_v33, %v1805_v38 }
 0x1f4   : > { %v3682_v52 = vadd.f32 %v1866_v37, %v3504_v40  ;;  %v1837_v2 = vpop.permute.xlu0 %1836  ;;  %v1922_v34 = vpop.permute.xlu2 %1921 }
 0x1f5   : > { %v1874_v45 = vmul.f32 %v3480_v33, %v1837_v2  ;;  %v2040_v28 = vmul.f32 %v3658_v13, %v1922_v34 }
 0x1f7   : > { %v3687_v46 = vadd.f32 %v1874_v45, %v3531_v1  ;;  %v2072_v6 = vadd.f32 %v2040_v28, %v3515_v31 }
 0x1f9   : > { %v1817_v27 = vpop.permute.xlu1 %1816  ;;  %2105 = vst.msk [vmem:[%s3671_s15 + $0x18] sm:$0xff] %vm2101_vm2, %v2072_v6 }
 0x1fa   : > { %v1869_v49 = vmul.f32 %v3480_v33, %v1817_v27 }
 0x1fc   : > { %v3694_v40 = vadd.f32 %v1869_v49, %v3523_v23  ;;  %v1930_v26 = vpop.permute.xlu2 %1929 }
 0x1fd   : > { %v1914_v8 = vpop.permute.xlu0 %1913  ;;  %v2042_v41 = vmul.f32 %v3658_v13, %v1930_v26 }
 0x1fe   : > { %v2038_v51 = vmul.f32 %v3658_v13, %v1914_v8 }
 0x1ff   : > { %v2074_v1 = vadd.f32 %v2042_v41, %v3534_v47 }
 0x200   : > { %v2070_v31 = vadd.f32 %v2038_v51, %v3551_v22 }
 0x201   : > { %v1829_v11 = vpop.permute.xlu1 %1828  ;;  %2107 = vst.msk [vmem:[%s3671_s15 + $0x28] sm:$0xff] %vm2101_vm2, %v2074_v1 }
 0x202   : > { %2103 = vst.msk [vmem:[%s3671_s15 + $0x8] sm:$0xff] %vm2101_vm2, %v2070_v31  ;;  %v1872_v23 = vmul.f32 %v3480_v33, %v1829_v11 }
 0x204   : > { %v3706_v12 = vadd.f32 %v1872_v23, %v3540_v18  ;;  %v1942_v50 = vpop.permute.xlu2 %1941 }
 0x205   : > { %v1934_v39 = vpop.permute.xlu0 %1933  ;;  %v2045_v48 = vmul.f32 %v3658_v13, %v1942_v50 }
 0x206   : > { %v2043_v47 = vmul.f32 %v3658_v13, %v1934_v39 }
 0x207   : > { %v2077_v22 = vadd.f32 %v2045_v48, %v3548_v7 }
 0x208   : > { %v2075_v30 = vadd.f32 %v2043_v47, %v3566_v4 }
 0x209   : > { %v1841_v43 = vpop.permute.xlu1 %1840  ;;  %2110 = vst.msk [vmem:[%s3671_s15 + $0x40] sm:$0xff] %vm2101_vm2, %v2077_v22 }
 0x20a   : > { %2108 = vst.msk [vmem:[%s3671_s15 + $0x30] sm:$0xff] %vm2101_vm2, %v2075_v30  ;;  %v1875_v18 = vmul.f32 %v3480_v33, %v1841_v43 }
 0x20c   : > { %v3718_v59 = vadd.f32 %v1875_v18, %v3557_v61  ;;  %v1954_v0 = vpop.permute.xlu2 %1953 }
 0x20d   : > { %v1946_v5 = vpop.permute.xlu0 %1945  ;;  %v2048_v42 = vmul.f32 %v3658_v13, %v1954_v0 }
 0x20e   : > { %v2046_v7 = vmul.f32 %v3658_v13, %v1946_v5 }
 0x20f   : > { %v2080_v4 = vadd.f32 %v2048_v42, %v3563_v10 }
 0x210   : > { %v2078_v58 = vadd.f32 %v2046_v7, %v3581_v53 }
 0x211   : > { %2113 = vst.msk [vmem:[%s3671_s15 + $0x58] sm:$0xff] %vm2101_vm2, %v2080_v4 }
 0x212   : > { %2111 = vst.msk [vmem:[%s3671_s15 + $0x48] sm:$0xff] %vm2101_vm2, %v2078_v58  ;;  %v1918_v33 = vpop.permute.xlu1 %1917 }
 0x213   : > { %v2039_v61 = vmul.f32 %v3658_v13, %v1918_v33 }
 0x214   : > { %v1966_v24 = vpop.permute.xlu2 %1965 }
 0x215   : > { %v2071_v25 = vadd.f32 %v2039_v61, %v3573_v29  ;;  %v1958_v57 = vpop.permute.xlu0 %1957  ;;  %v2051_v16 = vmul.f32 %v3658_v13, %v1966_v24 }
 0x216   : > { %v2049_v38 = vmul.f32 %v3658_v13, %v1958_v57 }
 0x217   : > { %2104 = vst.msk [vmem:[%s3671_s15 + $0x10] sm:$0xff] %vm2101_vm2, %v2071_v25  ;;  %v2083_v10 = vadd.f32 %v2051_v16, %v3578_v60 }
 0x218   : > { %v2081_v53 = vadd.f32 %v2049_v38, %v3596_v20 }
 0x219   : > { %2116 = vst.msk [vmem:[%s3671_s15 + $0x70] sm:$0xff] %vm2101_vm2, %v2083_v10 }
 0x21a   : > { %2114 = vst.msk [vmem:[%s3671_s15 + $0x60] sm:$0xff] %vm2101_vm2, %v2081_v53  ;;  %v1926_v37 = vpop.permute.xlu1 %1925 }
 0x21b   : > { %v2041_v29 = vmul.f32 %v3658_v13, %v1926_v37 }
 0x21c   : > { %v1978_v2 = vpop.permute.xlu2 %1977 }
 0x21d   : > { %v2073_v34 = vadd.f32 %v2041_v29, %v3588_v19  ;;  %v1970_v45 = vpop.permute.xlu0 %1969  ;;  %v2054_v28 = vmul.f32 %v3658_v13, %v1978_v2 }
 0x21e   : > { %v2052_v6 = vmul.f32 %v3658_v13, %v1970_v45 }
 0x21f   : > { %2106 = vst.msk [vmem:[%s3671_s15 + $0x20] sm:$0xff] %vm2101_vm2, %v2073_v34  ;;  %v2086_v60 = vadd.f32 %v2054_v28, %v3593_v36 }
 0x220   : > { %v2084_v20 = vadd.f32 %v2052_v6, %v3611_v62 }
 0x221   : > { %2119 = vst.msk [vmem:[%s3671_s15 + $0x88] sm:$0xff] %vm2101_vm2, %v2086_v60 }
 0x222   : > { %2117 = vst.msk [vmem:[%s3671_s15 + $0x78] sm:$0xff] %vm2101_vm2, %v2084_v20  ;;  %v1938_v27 = vpop.permute.xlu1 %1937 }
 0x223   : > { %v2044_v19 = vmul.f32 %v3658_v13, %v1938_v27 }
 0x224   : > { %v1990_v49 = vpop.permute.xlu2 %1989 }
 0x225   : > { %v2076_v26 = vadd.f32 %v2044_v19, %v3603_v44  ;;  %v1982_v8 = vpop.permute.xlu0 %1981  ;;  %v2057_v41 = vmul.f32 %v3658_v13, %v1990_v49 }
 0x226   : > { %v2055_v51 = vmul.f32 %v3658_v13, %v1982_v8 }
 0x227   : > { %2109 = vst.msk [vmem:[%s3671_s15 + $0x38] sm:$0xff] %vm2101_vm2, %v2076_v26  ;;  %v2089_v36 = vadd.f32 %v2057_v41, %v3608_v17 }
 0x228   : > { %v2087_v62 = vadd.f32 %v2055_v51, %v3626_v21 }
 0x229   : > { %2122 = vst.msk [vmem:[%s3671_s15 + $0xa0] sm:$0xff] %vm2101_vm2, %v2089_v36 }
 0x22a   : > { %2120 = vst.msk [vmem:[%s3671_s15 + $0x90] sm:$0xff] %vm2101_vm2, %v2087_v62  ;;  %v1950_v1 = vpop.permute.xlu1 %1949 }
 0x22b   : > { %v2047_v44 = vmul.f32 %v3658_v13, %v1950_v1 }
 0x22c   : > { %v2002_v31 = vpop.permute.xlu2 %2001 }
 0x22d   : > { %v2079_v11 = vadd.f32 %v2047_v44, %v3618_v35  ;;  %v1994_v23 = vpop.permute.xlu0 %1993  ;;  %v2060_v50 = vmul.f32 %v3658_v13, %v2002_v31 }
 0x22e   : > { %v2058_v39 = vmul.f32 %v3658_v13, %v1994_v23 }
 0x22f   : > { %2112 = vst.msk [vmem:[%s3671_s15 + $0x50] sm:$0xff] %vm2101_vm2, %v2079_v11  ;;  %v2092_v17 = vadd.f32 %v2060_v50, %v3623_v54 }
 0x230   : > { %v2090_v21 = vadd.f32 %v2058_v39, %v3640_v32 }
 0x231   : > { %2125 = vst.msk [vmem:[%s3671_s15 + $0xb8] sm:$0xff] %vm2101_vm2, %v2092_v17 }
 0x232   : > { %2123 = vst.msk [vmem:[%s3671_s15 + $0xa8] sm:$0xff] %vm2101_vm2, %v2090_v21  ;;  %v1962_v48 = vpop.permute.xlu1 %1961 }
 0x233   : > { %v2050_v35 = vmul.f32 %v3658_v13, %v1962_v48 }
 0x234   : > { %v2014_v47 = vpop.permute.xlu2 %2013 }
 0x235   : > { %v2082_v22 = vadd.f32 %v2050_v35, %v3632_v3  ;;  %v2006_v30 = vpop.permute.xlu0 %2005  ;;  %v2063_v43 = vmul.f32 %v3658_v13, %v2014_v47 }
 0x236   : > { %v2061_v18 = vmul.f32 %v3658_v13, %v2006_v30 }
 0x237   : > { %2115 = vst.msk [vmem:[%s3671_s15 + $0x68] sm:$0xff] %vm2101_vm2, %v2082_v22  ;;  %v2095_v54 = vadd.f32 %v2063_v43, %v3637_v14 }
 0x238   : > { %v2093_v32 = vadd.f32 %v2061_v18, %v3654_v63 }
 0x239   : > { %2128 = vst.msk [vmem:[%s3671_s15 + $0xd0] sm:$0xff] %vm2101_vm2, %v2095_v54 }
 0x23a   : > { %2126 = vst.msk [vmem:[%s3671_s15 + $0xc0] sm:$0xff] %vm2101_vm2, %v2093_v32  ;;  %v1974_v0 = vpop.permute.xlu1 %1973 }
 0x23b   : > { %v2053_v3 = vmul.f32 %v3658_v13, %v1974_v0 }
 0x23c   : > { %v2026_v5 = vpop.permute.xlu2 %2025 }
 0x23d   : > { %v2085_v42 = vadd.f32 %v2053_v3, %v3646_v56  ;;  %v2018_v7 = vpop.permute.xlu0 %2017  ;;  %v2066_v4 = vmul.f32 %v3658_v13, %v2026_v5 }
 0x23e   : > { %v2064_v58 = vmul.f32 %v3658_v13, %v2018_v7 }
 0x23f   : > { %2118 = vst.msk [vmem:[%s3671_s15 + $0x80] sm:$0xff] %vm2101_vm2, %v2085_v42  ;;  %v2098_v14 = vadd.f32 %v2066_v4, %v3651_v9 }
 0x240   : > { %v2096_v63 = vadd.f32 %v2064_v58, %v3674_v55 }
 0x241   : > { %2131 = vst.msk [vmem:[%s3671_s15 + $0xe8] sm:$0xff] %vm2101_vm2, %v2098_v14 }
 0x242   : > { %2129 = vst.msk [vmem:[%s3671_s15 + $0xd8] sm:$0xff] %vm2101_vm2, %v2096_v63  ;;  %v1986_v33 = vpop.permute.xlu1 %1985 }
 0x243   : > { %v2056_v56 = vmul.f32 %v3658_v13, %v1986_v33 }
 0x245   : > { %v2088_v61 = vadd.f32 %v2056_v56, %v3662_v15  ;;  %v2030_v24 = vpop.permute.xlu0 %2029 }
 0x246   : > { %v2067_v25 = vmul.f32 %v3658_v13, %v2030_v24 }
 0x247   : > { %2121 = vst.msk [vmem:[%s3671_s15 + $0x98] sm:$0xff] %vm2101_vm2, %v2088_v61 }
 0x248   : > { %v2099_v9 = vadd.f32 %v2067_v25, %v3687_v46 }
 0x24a   : > { %2132 = vst.msk [vmem:[%s3671_s15 + $0xf0] sm:$0xff] %vm2101_vm2, %v2099_v9  ;;  %v1998_v55 = vpop.permute.xlu1 %1997 }
 0x24b   : > { %v2059_v57 = vmul.f32 %v3658_v13, %v1998_v55 }
 0x24d   : > { %v2091_v16 = vadd.f32 %v2059_v57, %v3682_v52 }
 0x24f   : > { %2124 = vst.msk [vmem:[%s3671_s15 + $0xb0] sm:$0xff] %vm2101_vm2, %v2091_v16 }
 0x252   : > { %v2010_v38 = vpop.permute.xlu1 %2009 }
 0x253   : > { %v2062_v15 = vmul.f32 %v3658_v13, %v2010_v38 }
 0x255   : > { %v2094_v10 = vadd.f32 %v2062_v15, %v3694_v40 }
 0x257   : > { %2127 = vst.msk [vmem:[%s3671_s15 + $0xc8] sm:$0xff] %vm2101_vm2, %v2094_v10 }
 0x25a   : > { %v2022_v53 = vpop.permute.xlu1 %2021 }
 0x25b   : > { %v2065_v46 = vmul.f32 %v3658_v13, %v2022_v53 }
 0x25d   : > { %v2097_v37 = vadd.f32 %v2065_v46, %v3706_v12 }
 0x25f   : > { %2130 = vst.msk [vmem:[%s3671_s15 + $0xe0] sm:$0xff] %vm2101_vm2, %v2097_v37 }
 0x262   : > { %v2034_v29 = vpop.permute.xlu1 %2033 }
 0x263   : > { %v2068_v2 = vmul.f32 %v3658_v13, %v2034_v29 }
 0x265   : > { %v2100_v52 = vadd.f32 %v2068_v2, %v3718_v59 }
 0x267   : > { %2133 = vst.msk [vmem:[%s3671_s15 + $0xf8] sm:$0xff] %vm2101_vm2, %v2100_v52 }
 0x268 PF: > { %s15_s18 = sadd.s32 1, %s2236_s18  }
 0x269   : > { %p12_p4 = scmp.ge.s32.totalorder %s15_s18, 4  }
 0x26b   :  { %14 = sbr.rel (!%p12_p4) target bundleno = 1 (0x1), region = 72 }

</bundles_post_ra>
